<compile_context>
chip_gen: v6e
topology: v6e:2x2x1
jax: 0.10.0
libtpu: 0.0.40
codegen_flags: <defaults>
</compile_context>

<pallas_src>
import math

import jax
import jax.numpy as jnp
from jax import lax
from jax.experimental import pallas as pl
from jax.experimental.pallas import tpu as pltpu

# ----------------------- model hyper-parameters (from __init__) -----------------
FRAME_SIZE = 64          # global `frame_size` used by the PyTorch module
CNN_STRIDE = 2
POOL = 2
KSIZE = 7
PAD = 3
C_IN = 1
C1 = 16                  # conv1 out channels
C2 = 32                  # conv2 out channels
L1 = FRAME_SIZE // CNN_STRIDE          # 32 conv1 output positions
M1POS = L1 // POOL                     # 16 pooled positions after block 1
L2 = M1POS // CNN_STRIDE               # 8 conv2 output positions
P2POS = L2 // POOL                     # 4 pooled positions after block 2
PRE1 = 2 * M1POS * C1                  # 512 conv1 columns (pool-parity major, pre-pool)
PRE2 = 2 * P2POS * C2                  # 256 conv2 columns
POST_CNN = C2 * P2POS                  # 128 (== frame_size*32 // (2+2)**2)
HIDDEN = POST_CNN // 2                 # 64
LEAKY_SLOPE = 0.01                     # nn.LeakyReLU default
SUBLANE = 8


def _round_up(n, m):
    return ((n + m - 1) // m) * m


def _funnel_dims():
    dims = []
    prev, n = HIDDEN, HIDDEN // 2
    while n > 2:
        dims.append((prev, n))
        prev, n = n, n // 2
    dims.append((prev, 2))
    return tuple(dims)


FUNNEL_DIMS = _funnel_dims()                    # ((64,32),(32,16),(16,8),(8,4),(4,2))
N_MLP = len(FUNNEL_DIMS)
MLP_ROW_OFFS = tuple(sum(d for d, _ in FUNNEL_DIMS[:i]) for i in range(N_MLP))
MLP_ROWS_PAD = _round_up(sum(d for d, _ in FUNNEL_DIMS), SUBLANE)      # 128
MLP_MAX_OUT = max(o for _, o in FUNNEL_DIMS)                           # 32
BIAS_ROWS = _round_up(3 + N_MLP, SUBLANE)                              # 8


# ----------------------------- fused Pallas kernel ------------------------------
def make_fused_kernel(seq_len, batch, bpad):
    """conv1 -> ReLU -> pool -> conv2 -> ReLU -> pool -> Elman RNN(tanh) -> funnel MLP."""
    f32, bf16 = jnp.float32, jnp.bfloat16

    def kernel(x_ref, c1m_ref, c2m_ref, wrnn_ref, wmlp_ref, bias_ref,
               out_ref, hn_ref, xw_ref, z_ref):
        bias = bias_ref[...]                                            # (8, 512) f32

        # ---- conv block 1: lane-dense Toeplitz matmul + bias, fused ReLU + parity pool
        x = x_ref[...].astype(bf16)                                     # (rows, 64)
        y1 = jnp.dot(x, c1m_ref[...],
                     preferred_element_type=f32) + bias[0:1, :PRE1]     # (rows, 512)
        half1 = M1POS * C1                                              # 256
        a1 = jnp.maximum(jnp.maximum(y1[:, :half1], y1[:, half1:]), 0.0)

        # ---- conv block 2
        y2 = jnp.dot(a1.astype(bf16), c2m_ref[...],
                     preferred_element_type=f32) + bias[1:2, :PRE2]     # (rows, 256)
        half2 = P2POS * C2                                              # 128
        a2 = jnp.maximum(jnp.maximum(y2[:, :half2], y2[:, half2:]), 0.0)

        # ---- RNN input projection hoisted out of the recurrence (one matmul, all rows)
        wih = wrnn_ref[:POST_CNN, :]                                    # (128, 64) bf16
        xw = jnp.dot(a2.astype(bf16), wih,
                     preferred_element_type=f32) + bias[2:3, :HIDDEN]   # (rows, 64)

        # ---- expand compact (s, b) rows into the time-major (s, bpad) recurrence layout
        if bpad == batch:                                               # already aligned
            xw_ref[...] = xw
        else:
            xw_ref[...] = jnp.zeros((seq_len * bpad, HIDDEN), f32)
            for t in range(seq_len):                                    # static slices
                xw_ref[t * bpad:t * bpad + batch, :] = xw[t * batch:(t + 1) * batch, :]

        # ---- Elman recurrence (tanh); only (bpad,64)@(64,64)+tanh is on the serial path
        whh = wrnn_ref[POST_CNN:, :]                                    # (64, 64) bf16

        def step(sl, h):
            x_t = xw_ref[sl, :]
            h = jnp.tanh(x_t + jnp.dot(h.astype(bf16), whh,
                                       preferred_element_type=f32))
            z_ref[sl, :] = h                                            # per-step VMEM store
            return h

        h = jnp.zeros((bpad, HIDDEN), f32)                              # state=None -> 0
        if seq_len <= 32:                                               # static unroll
            for t in range(seq_len):
                h = step(slice(t * bpad, (t + 1) * bpad), h)
        else:                                                           # long sequences
            def body(t, hh):
                off = pl.multiple_of(t * bpad, SUBLANE)
                return step(pl.ds(off, bpad), hh)
            h = lax.fori_loop(0, seq_len, body, h, unroll=8)
        hn_ref[...] = h

        # ---- funnel MLP on all hidden rows at once (bf16 weights, f32 accumulation)
        z = z_ref[...]                                                  # (S*bpad, 64) f32
        for i, (din, dout) in enumerate(FUNNEL_DIMS):
            off = MLP_ROW_OFFS[i]
            w = wmlp_ref[off:off + din, :dout]                          # bf16 slab slice
            z = jnp.dot(z.astype(bf16), w,
                        preferred_element_type=f32) + bias[3 + i:4 + i, :dout]
            if i + 1 < N_MLP:
                z = jnp.where(z >= 0, z, LEAKY_SLOPE * z)               # LeakyReLU (f32)
        out_ref[...] = 0.5 * (jnp.tanh(0.5 * z) + 1.0)                  # stable sigmoid

    return kernel


# --------------------- parameter preparation (pure JAX, run once) ----------------
def _conv1_as_matrix(w1, b1):
    """Dense (64, 512) matrix for conv1; col = parity*256 + m*16 + c (pool-parity major)."""
    P, M, C, K = 2, M1POS, C1, KSIZE
    par = jnp.arange(P).reshape(P, 1, 1, 1)
    m = jnp.arange(M).reshape(1, M, 1, 1)
    c = jnp.arange(C).reshape(1, 1, C, 1)
    k = jnp.arange(K).reshape(1, 1, 1, K)
    rows = CNN_STRIDE * (2 * m + par) + k - PAD          # input sample index
    cols = par * (M * C) + m * C + c
    vals = w1[:, 0, :][c, k]                             # (1,1,C,K)
    valid = (rows >= 0) & (rows < FRAME_SIZE)
    shape = (P, M, C, K)
    rows = jnp.broadcast_to(rows, shape).reshape(-1)
    cols = jnp.broadcast_to(cols, shape).reshape(-1)
    vals = jnp.broadcast_to(vals, shape).reshape(-1)
    valid = jnp.broadcast_to(valid, shape).reshape(-1)
    mat = jnp.zeros((FRAME_SIZE, P * M * C), jnp.float32)
    mat = mat.at[jnp.clip(rows, 0, FRAME_SIZE - 1), cols].add(
        jnp.where(valid, vals, 0.0))
    bias = jnp.broadcast_to(b1, (P, M, C)).reshape(-1)
    return mat, bias


def _conv2_as_matrix(w2, b2):
    """Dense (256, 256) matrix for conv2; row = m*16 + ci, col = parity*128 + p*32 + co."""
    P, Q, CO, CI, K = 2, P2POS, C2, C1, KSIZE
    par = jnp.arange(P).reshape(P, 1, 1, 1, 1)
    p = jnp.arange(Q).reshape(1, Q, 1, 1, 1)
    co = jnp.arange(CO).reshape(1, 1, CO, 1, 1)
    ci = jnp.arange(CI).reshape(1, 1, 1, CI, 1)
    k = jnp.arange(K).reshape(1, 1, 1, 1, K)
    m_in = CNN_STRIDE * (2 * p + par) + k - PAD          # pooled conv1 position index
    valid = (m_in >= 0) & (m_in < M1POS)
    rows = jnp.clip(m_in, 0, M1POS - 1) * CI + ci
    cols = par * (Q * CO) + p * CO + co
    vals = w2[co, ci, k]                                 # (1,1,CO,CI,K)
    shape = (P, Q, CO, CI, K)
    rows = jnp.broadcast_to(rows, shape).reshape(-1)
    cols = jnp.broadcast_to(cols, shape).reshape(-1)
    vals = jnp.broadcast_to(vals, shape).reshape(-1)
    valid = jnp.broadcast_to(valid, shape).reshape(-1)
    mat = jnp.zeros((M1POS * CI, P * Q * CO), jnp.float32)
    mat = mat.at[rows, cols].add(jnp.where(valid, vals, 0.0))
    bias = jnp.broadcast_to(b2, (P, Q, CO)).reshape(-1)
    return mat, bias


def prepare_params(params):
    """Build kernel-ready tensors once (Toeplitz conv mats, packed bf16 weights, bias slab)."""
    c1m, c1b = _conv1_as_matrix(params["conv1_w"], params["conv1_b"])
    c2m, c2b = _conv2_as_matrix(params["conv2_w"], params["conv2_b"])

    # fold the torch channel-major flatten (feature = c2*4 + p) into W_ih: our conv output
    # feature order is (p*32 + c2), so permute W_ih^T rows accordingly.
    wih_t = params["w_ih"].T                                             # (128, 64)
    wih_perm = wih_t.reshape(C2, P2POS, HIDDEN).transpose(1, 0, 2).reshape(POST_CNN, HIDDEN)
    whh_t = params["w_hh"].T                                             # (64, 64)
    w_rnn = jnp.concatenate([wih_perm, whh_t], axis=0)                   # (192, 64)

    # pack all funnel weights into one slab (row offsets are multiples of 8)
    w_mlp = jnp.zeros((MLP_ROWS_PAD, MLP_MAX_OUT), jnp.float32)
    for (w, _), off, (din, dout) in zip(params["mlp"], MLP_ROW_OFFS, FUNNEL_DIMS):
        w_mlp = w_mlp.at[off:off + din, :dout].set(w.T)

    # pack all biases (kept f32) into one slab: conv1 | conv2 | rnn | funnel layers
    bias = jnp.zeros((BIAS_ROWS, PRE1), jnp.float32)
    bias = bias.at[0, :PRE1].set(c1b)
    bias = bias.at[1, :PRE2].set(c2b)
    bias = bias.at[2, :HIDDEN].set(params["b_ih"] + params["b_hh"])
    for i, ((_, b), (_, dout)) in enumerate(zip(params["mlp"], FUNNEL_DIMS)):
        bias = bias.at[3 + i, :dout].set(b)

    return {"c1m": c1m.astype(jnp.bfloat16), "c2m": c2m.astype(jnp.bfloat16),
            "w_rnn": w_rnn.astype(jnp.bfloat16), "w_mlp": w_mlp.astype(jnp.bfloat16),
            "bias": bias}


# ----------------------------- forward wrapper -----------------------------------
def forward(prep, batch_inputs):
    """batch_inputs: (B, S, FRAME_SIZE) float32 -> ((B, S, 2), (1, B, HIDDEN))."""
    b, s, f = batch_inputs.shape
    assert f == FRAME_SIZE
    bpad = _round_up(b, SUBLANE)
    rows = _round_up(s * b, SUBLANE)

    # compact time-major rows for the conv / projection / funnel stages
    xt = jnp.transpose(batch_inputs, (1, 0, 2)).reshape(s * b, f).astype(jnp.float32)
    if rows != s * b:
        xt = jnp.pad(xt, ((0, rows - s * b), (0, 0)))

    vmem = pl.BlockSpec(memory_space=pltpu.MemorySpace.VMEM)
    out_full, h_full = pl.pallas_call(
        make_fused_kernel(s, b, bpad),
        out_shape=(jax.ShapeDtypeStruct((s * bpad, 2), jnp.float32),
                   jax.ShapeDtypeStruct((bpad, HIDDEN), jnp.float32)),
        in_specs=[vmem] * 6,
        out_specs=(vmem, vmem),
        scratch_shapes=[pltpu.VMEM((s * bpad, HIDDEN), jnp.float32),    # time-major xw
                        pltpu.VMEM((s * bpad, HIDDEN), jnp.float32)],   # hidden states
        compiler_params=pltpu.CompilerParams(vmem_limit_bytes=32 * 1024 * 1024),
    )(xt, prep["c1m"], prep["c2m"], prep["w_rnn"], prep["w_mlp"], prep["bias"])

    out = out_full.reshape(s, bpad, 2)[:, :b, :].transpose(1, 0, 2)     # (B, S, 2)
    return out, h_full[:b][None]                                        # new_state (1,B,H)


# ----------------------------- deterministic init --------------------------------
def init_params(key):
    def u(k, shape, bound):
        return jax.random.uniform(k, shape, jnp.float32, -bound, bound)

    keys = iter(jax.random.split(key, 8 + 2 * N_MLP))
    p = {}
    bc1 = 1.0 / math.sqrt(C_IN * KSIZE)
    p["conv1_w"] = u(next(keys), (C1, C_IN, KSIZE), bc1)
    p["conv1_b"] = u(next(keys), (C1,), bc1)
    bc2 = 1.0 / math.sqrt(C1 * KSIZE)
    p["conv2_w"] = u(next(keys), (C2, C1, KSIZE), bc2)
    p["conv2_b"] = u(next(keys), (C2,), bc2)
    br = 1.0 / math.sqrt(HIDDEN)
    p["w_ih"] = u(next(keys), (HIDDEN, POST_CNN), br)
    p["w_hh"] = u(next(keys), (HIDDEN, HIDDEN), br)
    p["b_ih"] = u(next(keys), (HIDDEN,), br)
    p["b_hh"] = u(next(keys), (HIDDEN,), br)

    # funnel: 64 -> 32 -> 16 -> 8 -> 4 -> 2 (Linear+LeakyReLU ... Linear+Sigmoid)
    mlp = []
    for fin, fout in FUNNEL_DIMS:
        bl = 1.0 / math.sqrt(fin)
        mlp.append((u(next(keys), (fout, fin), bl), u(next(keys), (fout,), bl)))
    p["mlp"] = mlp
    return p


if __name__ == "__main__":
    key = jax.random.PRNGKey(0)
    pkey, xkey = jax.random.split(key)
    params = init_params(pkey)
    prep = prepare_params(params)          # built once, outside the hot path

    batch, seq = 2, 8
    x = jax.random.normal(xkey, (batch, seq, FRAME_SIZE), jnp.float32)

    fwd = jax.jit(forward)
    out, new_state = fwd(prep, x)
    jax.block_until_ready((out, new_state))

    assert out.shape == (batch, seq, 2)
    assert new_state.shape == (1, batch, HIDDEN)
    assert bool(jnp.all(jnp.isfinite(out)))
    assert bool(jnp.all((out >= 0.0) & (out <= 1.0)))   # sigmoid range
    print("KERNEL_OK")
</pallas_src>

<mosaic_0001>
module attributes {stable_mosaic.version = 11 : i64} {
  func.func @kernel(%arg0: memref<16x64xf32, #tpu.memory_space<vmem>>, %arg1: memref<64x512xbf16, #tpu.memory_space<vmem>>, %arg2: memref<256x256xbf16, #tpu.memory_space<vmem>>, %arg3: memref<192x64xbf16, #tpu.memory_space<vmem>>, %arg4: memref<128x32xbf16, #tpu.memory_space<vmem>>, %arg5: memref<8x512xf32, #tpu.memory_space<vmem>>, %arg6: memref<64x2xf32, #tpu.memory_space<vmem>>, %arg7: memref<8x64xf32, #tpu.memory_space<vmem>>, %arg8: memref<64x64xf32, #tpu.memory_space<vmem>>, %arg9: memref<64x64xf32, #tpu.memory_space<vmem>>) attributes {dimension_semantics = [], scalar_prefetch = 0 : i64, scratch_operands = 2 : i64, tpu.core_type = #tpu.core_type<tc>} {
    %c0 = arith.constant 0 : index
    %c0_0 = arith.constant 0 : index
    %0 = vector.load %arg5[%c0, %c0_0] : memref<8x512xf32, #tpu.memory_space<vmem>>, vector<8x512xf32>
    %c0_1 = arith.constant 0 : index
    %c0_2 = arith.constant 0 : index
    %1 = vector.load %arg0[%c0_1, %c0_2] : memref<16x64xf32, #tpu.memory_space<vmem>>, vector<16x64xf32>
    %2 = arith.truncf %1 : vector<16x64xf32> to vector<16x64xbf16>
    %c0_3 = arith.constant 0 : index
    %c0_4 = arith.constant 0 : index
    %3 = vector.load %arg1[%c0_3, %c0_4] : memref<64x512xbf16, #tpu.memory_space<vmem>>, vector<64x512xbf16>
    %cst = arith.constant dense<0.000000e+00> : vector<16x512xf32>
    %4 = tpu.matmul %2, %3, %cst {dimension_numbers = #tpu.dot_dimension_numbers<[1], [0], [0], [1], [0, 0, 1, 1], [], []>} : vector<16x64xbf16>, vector<64x512xbf16>, vector<16x512xf32> -> vector<16x512xf32>
    %5 = vector.extract_strided_slice %0 {offsets = [0, 0], sizes = [1, 512], strides = [1, 1]} : vector<8x512xf32> to vector<1x512xf32>
    %6 = vector.broadcast %5 : vector<1x512xf32> to vector<16x512xf32>
    %7 = arith.addf %4, %6 : vector<16x512xf32>
    %8 = vector.extract_strided_slice %7 {offsets = [0, 0], sizes = [16, 256], strides = [1, 1]} : vector<16x512xf32> to vector<16x256xf32>
    %9 = vector.extract_strided_slice %7 {offsets = [0, 256], sizes = [16, 256], strides = [1, 1]} : vector<16x512xf32> to vector<16x256xf32>
    %10 = arith.maximumf %8, %9 : vector<16x256xf32>
    %cst_5 = arith.constant 0.000000e+00 : f32
    %11 = vector.broadcast %cst_5 : f32 to vector<16x256xf32>
    %12 = arith.maximumf %10, %11 : vector<16x256xf32>
    %13 = arith.truncf %12 : vector<16x256xf32> to vector<16x256xbf16>
    %c0_6 = arith.constant 0 : index
    %c0_7 = arith.constant 0 : index
    %14 = vector.load %arg2[%c0_6, %c0_7] : memref<256x256xbf16, #tpu.memory_space<vmem>>, vector<256x256xbf16>
    %cst_8 = arith.constant dense<0.000000e+00> : vector<16x256xf32>
    %15 = tpu.matmul %13, %14, %cst_8 {dimension_numbers = #tpu.dot_dimension_numbers<[1], [0], [0], [1], [0, 0, 1, 1], [], []>} : vector<16x256xbf16>, vector<256x256xbf16>, vector<16x256xf32> -> vector<16x256xf32>
    %16 = vector.extract_strided_slice %0 {offsets = [1, 0], sizes = [1, 256], strides = [1, 1]} : vector<8x512xf32> to vector<1x256xf32>
    %17 = vector.broadcast %16 : vector<1x256xf32> to vector<16x256xf32>
    %18 = arith.addf %15, %17 : vector<16x256xf32>
    %19 = vector.extract_strided_slice %18 {offsets = [0, 0], sizes = [16, 128], strides = [1, 1]} : vector<16x256xf32> to vector<16x128xf32>
    %20 = vector.extract_strided_slice %18 {offsets = [0, 128], sizes = [16, 128], strides = [1, 1]} : vector<16x256xf32> to vector<16x128xf32>
    %21 = arith.maximumf %19, %20 : vector<16x128xf32>
    %cst_9 = arith.constant 0.000000e+00 : f32
    %22 = vector.broadcast %cst_9 : f32 to vector<16x128xf32>
    %23 = arith.maximumf %21, %22 : vector<16x128xf32>
    %c0_10 = arith.constant 0 : index
    %c0_11 = arith.constant 0 : index
    %24 = vector.load %arg3[%c0_10, %c0_11] : memref<192x64xbf16, #tpu.memory_space<vmem>>, vector<128x64xbf16>
    %25 = arith.truncf %23 : vector<16x128xf32> to vector<16x128xbf16>
    %cst_12 = arith.constant dense<0.000000e+00> : vector<16x64xf32>
    %26 = tpu.matmul %25, %24, %cst_12 {dimension_numbers = #tpu.dot_dimension_numbers<[1], [0], [0], [1], [0, 0, 1, 1], [], []>} : vector<16x128xbf16>, vector<128x64xbf16>, vector<16x64xf32> -> vector<16x64xf32>
    %27 = vector.extract_strided_slice %0 {offsets = [2, 0], sizes = [1, 64], strides = [1, 1]} : vector<8x512xf32> to vector<1x64xf32>
    %28 = vector.broadcast %27 : vector<1x64xf32> to vector<16x64xf32>
    %29 = arith.addf %26, %28 : vector<16x64xf32>
    %cst_13 = arith.constant 0.000000e+00 : f32
    %30 = vector.broadcast %cst_13 : f32 to vector<64x64xf32>
    %c0_14 = arith.constant 0 : index
    %c0_15 = arith.constant 0 : index
    %31 = vector.load %arg8[%c0_14, %c0_15] : memref<64x64xf32, #tpu.memory_space<vmem>>, vector<64x64xf32>
    tpu.vector_store %arg8[%c0_14, %c0_15], %30 {strides = array<i32>} : memref<64x64xf32, #tpu.memory_space<vmem>>, vector<64x64xf32>,
    %32 = vector.extract_strided_slice %29 {offsets = [0, 0], sizes = [2, 64], strides = [1, 1]} : vector<16x64xf32> to vector<2x64xf32>
    %c0_16 = arith.constant 0 : index
    %c0_17 = arith.constant 0 : index
    %33 = vector.load %arg8[%c0_16, %c0_17] : memref<64x64xf32, #tpu.memory_space<vmem>>, vector<2x64xf32>
    tpu.vector_store %arg8[%c0_16, %c0_17], %32 {strides = array<i32>} : memref<64x64xf32, #tpu.memory_space<vmem>>, vector<2x64xf32>,
    %34 = vector.extract_strided_slice %29 {offsets = [2, 0], sizes = [2, 64], strides = [1, 1]} : vector<16x64xf32> to vector<2x64xf32>
    %c8 = arith.constant 8 : index
    %c0_18 = arith.constant 0 : index
    %35 = vector.load %arg8[%c8, %c0_18] : memref<64x64xf32, #tpu.memory_space<vmem>>, vector<2x64xf32>
    tpu.vector_store %arg8[%c8, %c0_18], %34 {strides = array<i32>} : memref<64x64xf32, #tpu.memory_space<vmem>>, vector<2x64xf32>,
    %36 = vector.extract_strided_slice %29 {offsets = [4, 0], sizes = [2, 64], strides = [1, 1]} : vector<16x64xf32> to vector<2x64xf32>
    %c16 = arith.constant 16 : index
    %c0_19 = arith.constant 0 : index
    %37 = vector.load %arg8[%c16, %c0_19] : memref<64x64xf32, #tpu.memory_space<vmem>>, vector<2x64xf32>
    tpu.vector_store %arg8[%c16, %c0_19], %36 {strides = array<i32>} : memref<64x64xf32, #tpu.memory_space<vmem>>, vector<2x64xf32>,
    %38 = vector.extract_strided_slice %29 {offsets = [6, 0], sizes = [2, 64], strides = [1, 1]} : vector<16x64xf32> to vector<2x64xf32>
    %c24 = arith.constant 24 : index
    %c0_20 = arith.constant 0 : index
    %39 = vector.load %arg8[%c24, %c0_20] : memref<64x64xf32, #tpu.memory_space<vmem>>, vector<2x64xf32>
    tpu.vector_store %arg8[%c24, %c0_20], %38 {strides = array<i32>} : memref<64x64xf32, #tpu.memory_space<vmem>>, vector<2x64xf32>,
    %40 = vector.extract_strided_slice %29 {offsets = [8, 0], sizes = [2, 64], strides = [1, 1]} : vector<16x64xf32> to vector<2x64xf32>
    %c32 = arith.constant 32 : index
    %c0_21 = arith.constant 0 : index
    %41 = vector.load %arg8[%c32, %c0_21] : memref<64x64xf32, #tpu.memory_space<vmem>>, vector<2x64xf32>
    tpu.vector_store %arg8[%c32, %c0_21], %40 {strides = array<i32>} : memref<64x64xf32, #tpu.memory_space<vmem>>, vector<2x64xf32>,
    %42 = vector.extract_strided_slice %29 {offsets = [10, 0], sizes = [2, 64], strides = [1, 1]} : vector<16x64xf32> to vector<2x64xf32>
    %c40 = arith.constant 40 : index
    %c0_22 = arith.constant 0 : index
    %43 = vector.load %arg8[%c40, %c0_22] : memref<64x64xf32, #tpu.memory_space<vmem>>, vector<2x64xf32>
    tpu.vector_store %arg8[%c40, %c0_22], %42 {strides = array<i32>} : memref<64x64xf32, #tpu.memory_space<vmem>>, vector<2x64xf32>,
    %44 = vector.extract_strided_slice %29 {offsets = [12, 0], sizes = [2, 64], strides = [1, 1]} : vector<16x64xf32> to vector<2x64xf32>
    %c48 = arith.constant 48 : index
    %c0_23 = arith.constant 0 : index
    %45 = vector.load %arg8[%c48, %c0_23] : memref<64x64xf32, #tpu.memory_space<vmem>>, vector<2x64xf32>
    tpu.vector_store %arg8[%c48, %c0_23], %44 {strides = array<i32>} : memref<64x64xf32, #tpu.memory_space<vmem>>, vector<2x64xf32>,
    %46 = vector.extract_strided_slice %29 {offsets = [14, 0], sizes = [2, 64], strides = [1, 1]} : vector<16x64xf32> to vector<2x64xf32>
    %c56 = arith.constant 56 : index
    %c0_24 = arith.constant 0 : index
    %47 = vector.load %arg8[%c56, %c0_24] : memref<64x64xf32, #tpu.memory_space<vmem>>, vector<2x64xf32>
    tpu.vector_store %arg8[%c56, %c0_24], %46 {strides = array<i32>} : memref<64x64xf32, #tpu.memory_space<vmem>>, vector<2x64xf32>,
    %c128 = arith.constant 128 : index
    %c0_25 = arith.constant 0 : index
    %48 = vector.load %arg3[%c128, %c0_25] : memref<192x64xbf16, #tpu.memory_space<vmem>>, vector<64x64xbf16>
    %cst_26 = arith.constant 0.000000e+00 : f32
    %49 = vector.broadcast %cst_26 : f32 to vector<8x64xf32>
    %c0_27 = arith.constant 0 : index
    %c0_28 = arith.constant 0 : index
    %50 = vector.load %arg8[%c0_27, %c0_28] : memref<64x64xf32, #tpu.memory_space<vmem>>, vector<8x64xf32>
    %51 = arith.truncf %49 : vector<8x64xf32> to vector<8x64xbf16>
    %cst_29 = arith.constant dense<0.000000e+00> : vector<8x64xf32>
    %52 = tpu.matmul %51, %48, %cst_29 {dimension_numbers = #tpu.dot_dimension_numbers<[1], [0], [0], [1], [0, 0, 1, 1], [], []>} : vector<8x64xbf16>, vector<64x64xbf16>, vector<8x64xf32> -> vector<8x64xf32>
    %53 = arith.addf %50, %52 : vector<8x64xf32>
    %54 = math.tanh %53 : vector<8x64xf32>
    %c0_30 = arith.constant 0 : index
    %c0_31 = arith.constant 0 : index
    %55 = vector.load %arg9[%c0_30, %c0_31] : memref<64x64xf32, #tpu.memory_space<vmem>>, vector<8x64xf32>
    tpu.vector_store %arg9[%c0_30, %c0_31], %54 {strides = array<i32>} : memref<64x64xf32, #tpu.memory_space<vmem>>, vector<8x64xf32>,
    %c8_32 = arith.constant 8 : index
    %c0_33 = arith.constant 0 : index
    %56 = vector.load %arg8[%c8_32, %c0_33] : memref<64x64xf32, #tpu.memory_space<vmem>>, vector<8x64xf32>
    %57 = arith.truncf %54 : vector<8x64xf32> to vector<8x64xbf16>
    %cst_34 = arith.constant dense<0.000000e+00> : vector<8x64xf32>
    %58 = tpu.matmul %57, %48, %cst_34 {dimension_numbers = #tpu.dot_dimension_numbers<[1], [0], [0], [1], [0, 0, 1, 1], [], []>} : vector<8x64xbf16>, vector<64x64xbf16>, vector<8x64xf32> -> vector<8x64xf32>
    %59 = arith.addf %56, %58 : vector<8x64xf32>
    %60 = math.tanh %59 : vector<8x64xf32>
    %c8_35 = arith.constant 8 : index
    %c0_36 = arith.constant 0 : index
    %61 = vector.load %arg9[%c8_35, %c0_36] : memref<64x64xf32, #tpu.memory_space<vmem>>, vector<8x64xf32>
    tpu.vector_store %arg9[%c8_35, %c0_36], %60 {strides = array<i32>} : memref<64x64xf32, #tpu.memory_space<vmem>>, vector<8x64xf32>,
    %c16_37 = arith.constant 16 : index
    %c0_38 = arith.constant 0 : index
    %62 = vector.load %arg8[%c16_37, %c0_38] : memref<64x64xf32, #tpu.memory_space<vmem>>, vector<8x64xf32>
    %63 = arith.truncf %60 : vector<8x64xf32> to vector<8x64xbf16>
    %cst_39 = arith.constant dense<0.000000e+00> : vector<8x64xf32>
    %64 = tpu.matmul %63, %48, %cst_39 {dimension_numbers = #tpu.dot_dimension_numbers<[1], [0], [0], [1], [0, 0, 1, 1], [], []>} : vector<8x64xbf16>, vector<64x64xbf16>, vector<8x64xf32> -> vector<8x64xf32>
    %65 = arith.addf %62, %64 : vector<8x64xf32>
    %66 = math.tanh %65 : vector<8x64xf32>
    %c16_40 = arith.constant 16 : index
    %c0_41 = arith.constant 0 : index
    %67 = vector.load %arg9[%c16_40, %c0_41] : memref<64x64xf32, #tpu.memory_space<vmem>>, vector<8x64xf32>
    tpu.vector_store %arg9[%c16_40, %c0_41], %66 {strides = array<i32>} : memref<64x64xf32, #tpu.memory_space<vmem>>, vector<8x64xf32>,
    %c24_42 = arith.constant 24 : index
    %c0_43 = arith.constant 0 : index
    %68 = vector.load %arg8[%c24_42, %c0_43] : memref<64x64xf32, #tpu.memory_space<vmem>>, vector<8x64xf32>
    %69 = arith.truncf %66 : vector<8x64xf32> to vector<8x64xbf16>
    %cst_44 = arith.constant dense<0.000000e+00> : vector<8x64xf32>
    %70 = tpu.matmul %69, %48, %cst_44 {dimension_numbers = #tpu.dot_dimension_numbers<[1], [0], [0], [1], [0, 0, 1, 1], [], []>} : vector<8x64xbf16>, vector<64x64xbf16>, vector<8x64xf32> -> vector<8x64xf32>
    %71 = arith.addf %68, %70 : vector<8x64xf32>
    %72 = math.tanh %71 : vector<8x64xf32>
    %c24_45 = arith.constant 24 : index
    %c0_46 = arith.constant 0 : index
    %73 = vector.load %arg9[%c24_45, %c0_46] : memref<64x64xf32, #tpu.memory_space<vmem>>, vector<8x64xf32>
    tpu.vector_store %arg9[%c24_45, %c0_46], %72 {strides = array<i32>} : memref<64x64xf32, #tpu.memory_space<vmem>>, vector<8x64xf32>,
    %c32_47 = arith.constant 32 : index
    %c0_48 = arith.constant 0 : index
    %74 = vector.load %arg8[%c32_47, %c0_48] : memref<64x64xf32, #tpu.memory_space<vmem>>, vector<8x64xf32>
    %75 = arith.truncf %72 : vector<8x64xf32> to vector<8x64xbf16>
    %cst_49 = arith.constant dense<0.000000e+00> : vector<8x64xf32>
    %76 = tpu.matmul %75, %48, %cst_49 {dimension_numbers = #tpu.dot_dimension_numbers<[1], [0], [0], [1], [0, 0, 1, 1], [], []>} : vector<8x64xbf16>, vector<64x64xbf16>, vector<8x64xf32> -> vector<8x64xf32>
    %77 = arith.addf %74, %76 : vector<8x64xf32>
    %78 = math.tanh %77 : vector<8x64xf32>
    %c32_50 = arith.constant 32 : index
    %c0_51 = arith.constant 0 : index
    %79 = vector.load %arg9[%c32_50, %c0_51] : memref<64x64xf32, #tpu.memory_space<vmem>>, vector<8x64xf32>
    tpu.vector_store %arg9[%c32_50, %c0_51], %78 {strides = array<i32>} : memref<64x64xf32, #tpu.memory_space<vmem>>, vector<8x64xf32>,
    %c40_52 = arith.constant 40 : index
    %c0_53 = arith.constant 0 : index
    %80 = vector.load %arg8[%c40_52, %c0_53] : memref<64x64xf32, #tpu.memory_space<vmem>>, vector<8x64xf32>
    %81 = arith.truncf %78 : vector<8x64xf32> to vector<8x64xbf16>
    %cst_54 = arith.constant dense<0.000000e+00> : vector<8x64xf32>
    %82 = tpu.matmul %81, %48, %cst_54 {dimension_numbers = #tpu.dot_dimension_numbers<[1], [0], [0], [1], [0, 0, 1, 1], [], []>} : vector<8x64xbf16>, vector<64x64xbf16>, vector<8x64xf32> -> vector<8x64xf32>
    %83 = arith.addf %80, %82 : vector<8x64xf32>
    %84 = math.tanh %83 : vector<8x64xf32>
    %c40_55 = arith.constant 40 : index
    %c0_56 = arith.constant 0 : index
    %85 = vector.load %arg9[%c40_55, %c0_56] : memref<64x64xf32, #tpu.memory_space<vmem>>, vector<8x64xf32>
    tpu.vector_store %arg9[%c40_55, %c0_56], %84 {strides = array<i32>} : memref<64x64xf32, #tpu.memory_space<vmem>>, vector<8x64xf32>,
    %c48_57 = arith.constant 48 : index
    %c0_58 = arith.constant 0 : index
    %86 = vector.load %arg8[%c48_57, %c0_58] : memref<64x64xf32, #tpu.memory_space<vmem>>, vector<8x64xf32>
    %87 = arith.truncf %84 : vector<8x64xf32> to vector<8x64xbf16>
    %cst_59 = arith.constant dense<0.000000e+00> : vector<8x64xf32>
    %88 = tpu.matmul %87, %48, %cst_59 {dimension_numbers = #tpu.dot_dimension_numbers<[1], [0], [0], [1], [0, 0, 1, 1], [], []>} : vector<8x64xbf16>, vector<64x64xbf16>, vector<8x64xf32> -> vector<8x64xf32>
    %89 = arith.addf %86, %88 : vector<8x64xf32>
    %90 = math.tanh %89 : vector<8x64xf32>
    %c48_60 = arith.constant 48 : index
    %c0_61 = arith.constant 0 : index
    %91 = vector.load %arg9[%c48_60, %c0_61] : memref<64x64xf32, #tpu.memory_space<vmem>>, vector<8x64xf32>
    tpu.vector_store %arg9[%c48_60, %c0_61], %90 {strides = array<i32>} : memref<64x64xf32, #tpu.memory_space<vmem>>, vector<8x64xf32>,
    %c56_62 = arith.constant 56 : index
    %c0_63 = arith.constant 0 : index
    %92 = vector.load %arg8[%c56_62, %c0_63] : memref<64x64xf32, #tpu.memory_space<vmem>>, vector<8x64xf32>
    %93 = arith.truncf %90 : vector<8x64xf32> to vector<8x64xbf16>
    %cst_64 = arith.constant dense<0.000000e+00> : vector<8x64xf32>
    %94 = tpu.matmul %93, %48, %cst_64 {dimension_numbers = #tpu.dot_dimension_numbers<[1], [0], [0], [1], [0, 0, 1, 1], [], []>} : vector<8x64xbf16>, vector<64x64xbf16>, vector<8x64xf32> -> vector<8x64xf32>
    %95 = arith.addf %92, %94 : vector<8x64xf32>
    %96 = math.tanh %95 : vector<8x64xf32>
    %c56_65 = arith.constant 56 : index
    %c0_66 = arith.constant 0 : index
    %97 = vector.load %arg9[%c56_65, %c0_66] : memref<64x64xf32, #tpu.memory_space<vmem>>, vector<8x64xf32>
    tpu.vector_store %arg9[%c56_65, %c0_66], %96 {strides = array<i32>} : memref<64x64xf32, #tpu.memory_space<vmem>>, vector<8x64xf32>,
    %c0_67 = arith.constant 0 : index
    %c0_68 = arith.constant 0 : index
    %98 = vector.load %arg7[%c0_67, %c0_68] : memref<8x64xf32, #tpu.memory_space<vmem>>, vector<8x64xf32>
    tpu.vector_store %arg7[%c0_67, %c0_68], %96 {strides = array<i32>} : memref<8x64xf32, #tpu.memory_space<vmem>>, vector<8x64xf32>,
    %c0_69 = arith.constant 0 : index
    %c0_70 = arith.constant 0 : index
    %99 = vector.load %arg9[%c0_69, %c0_70] : memref<64x64xf32, #tpu.memory_space<vmem>>, vector<64x64xf32>
    %c0_71 = arith.constant 0 : index
    %c0_72 = arith.constant 0 : index
    %100 = vector.load %arg4[%c0_71, %c0_72] : memref<128x32xbf16, #tpu.memory_space<vmem>>, vector<64x32xbf16>
    %101 = arith.truncf %99 : vector<64x64xf32> to vector<64x64xbf16>
    %cst_73 = arith.constant dense<0.000000e+00> : vector<64x32xf32>
    %102 = tpu.matmul %101, %100, %cst_73 {dimension_numbers = #tpu.dot_dimension_numbers<[1], [0], [0], [1], [0, 0, 1, 1], [], []>} : vector<64x64xbf16>, vector<64x32xbf16>, vector<64x32xf32> -> vector<64x32xf32>
    %103 = vector.extract_strided_slice %0 {offsets = [3, 0], sizes = [1, 32], strides = [1, 1]} : vector<8x512xf32> to vector<1x32xf32>
    %104 = vector.broadcast %103 : vector<1x32xf32> to vector<64x32xf32>
    %105 = arith.addf %102, %104 : vector<64x32xf32>
    %cst_74 = arith.constant 0.000000e+00 : f32
    %106 = vector.broadcast %cst_74 : f32 to vector<64x32xf32>
    %107 = arith.cmpf oge, %105, %106 : vector<64x32xf32>
    %cst_75 = arith.constant 0.00999999977 : f32
    %108 = vector.broadcast %cst_75 : f32 to vector<64x32xf32>
    %109 = arith.mulf %108, %105 : vector<64x32xf32>
    %110 = arith.select %107, %105, %109 : vector<64x32xi1>, vector<64x32xf32>
    %c64 = arith.constant 64 : index
    %c0_76 = arith.constant 0 : index
    %111 = vector.load %arg4[%c64, %c0_76] : memref<128x32xbf16, #tpu.memory_space<vmem>>, vector<32x16xbf16>
    %112 = arith.truncf %110 : vector<64x32xf32> to vector<64x32xbf16>
    %cst_77 = arith.constant dense<0.000000e+00> : vector<64x16xf32>
    %113 = tpu.matmul %112, %111, %cst_77 {dimension_numbers = #tpu.dot_dimension_numbers<[1], [0], [0], [1], [0, 0, 1, 1], [], []>} : vector<64x32xbf16>, vector<32x16xbf16>, vector<64x16xf32> -> vector<64x16xf32>
    %114 = vector.extract_strided_slice %0 {offsets = [4, 0], sizes = [1, 16], strides = [1, 1]} : vector<8x512xf32> to vector<1x16xf32>
    %115 = vector.broadcast %114 : vector<1x16xf32> to vector<64x16xf32>
    %116 = arith.addf %113, %115 : vector<64x16xf32>
    %cst_78 = arith.constant 0.000000e+00 : f32
    %117 = vector.broadcast %cst_78 : f32 to vector<64x16xf32>
    %118 = arith.cmpf oge, %116, %117 : vector<64x16xf32>
    %cst_79 = arith.constant 0.00999999977 : f32
    %119 = vector.broadcast %cst_79 : f32 to vector<64x16xf32>
    %120 = arith.mulf %119, %116 : vector<64x16xf32>
    %121 = arith.select %118, %116, %120 : vector<64x16xi1>, vector<64x16xf32>
    %c96 = arith.constant 96 : index
    %c0_80 = arith.constant 0 : index
    %122 = vector.load %arg4[%c96, %c0_80] : memref<128x32xbf16, #tpu.memory_space<vmem>>, vector<16x8xbf16>
    %123 = arith.truncf %121 : vector<64x16xf32> to vector<64x16xbf16>
    %cst_81 = arith.constant dense<0.000000e+00> : vector<64x8xf32>
    %124 = tpu.matmul %123, %122, %cst_81 {dimension_numbers = #tpu.dot_dimension_numbers<[1], [0], [0], [1], [0, 0, 1, 1], [], []>} : vector<64x16xbf16>, vector<16x8xbf16>, vector<64x8xf32> -> vector<64x8xf32>
    %125 = vector.extract_strided_slice %0 {offsets = [5, 0], sizes = [1, 8], strides = [1, 1]} : vector<8x512xf32> to vector<1x8xf32>
    %126 = vector.broadcast %125 : vector<1x8xf32> to vector<64x8xf32>
    %127 = arith.addf %124, %126 : vector<64x8xf32>
    %cst_82 = arith.constant 0.000000e+00 : f32
    %128 = vector.broadcast %cst_82 : f32 to vector<64x8xf32>
    %129 = arith.cmpf oge, %127, %128 : vector<64x8xf32>
    %cst_83 = arith.constant 0.00999999977 : f32
    %130 = vector.broadcast %cst_83 : f32 to vector<64x8xf32>
    %131 = arith.mulf %130, %127 : vector<64x8xf32>
    %132 = arith.select %129, %127, %131 : vector<64x8xi1>, vector<64x8xf32>
    %c112 = arith.constant 112 : index
    %c0_84 = arith.constant 0 : index
    %133 = vector.load %arg4[%c112, %c0_84] : memref<128x32xbf16, #tpu.memory_space<vmem>>, vector<8x4xbf16>
    %134 = arith.truncf %132 : vector<64x8xf32> to vector<64x8xbf16>
    %cst_85 = arith.constant dense<0.000000e+00> : vector<64x4xf32>
    %135 = tpu.matmul %134, %133, %cst_85 {dimension_numbers = #tpu.dot_dimension_numbers<[1], [0], [0], [1], [0, 0, 1, 1], [], []>} : vector<64x8xbf16>, vector<8x4xbf16>, vector<64x4xf32> -> vector<64x4xf32>
    %136 = vector.extract_strided_slice %0 {offsets = [6, 0], sizes = [1, 4], strides = [1, 1]} : vector<8x512xf32> to vector<1x4xf32>
    %137 = vector.broadcast %136 : vector<1x4xf32> to vector<64x4xf32>
    %138 = arith.addf %135, %137 : vector<64x4xf32>
    %cst_86 = arith.constant 0.000000e+00 : f32
    %139 = vector.broadcast %cst_86 : f32 to vector<64x4xf32>
    %140 = arith.cmpf oge, %138, %139 : vector<64x4xf32>
    %cst_87 = arith.constant 0.00999999977 : f32
    %141 = vector.broadcast %cst_87 : f32 to vector<64x4xf32>
    %142 = arith.mulf %141, %138 : vector<64x4xf32>
    %143 = arith.select %140, %138, %142 : vector<64x4xi1>, vector<64x4xf32>
    %c120 = arith.constant 120 : index
    %c0_88 = arith.constant 0 : index
    %144 = vector.load %arg4[%c120, %c0_88] : memref<128x32xbf16, #tpu.memory_space<vmem>>, vector<4x2xbf16>
    %145 = arith.truncf %143 : vector<64x4xf32> to vector<64x4xbf16>
    %cst_89 = arith.constant dense<0.000000e+00> : vector<64x2xf32>
    %146 = tpu.matmul %145, %144, %cst_89 {dimension_numbers = #tpu.dot_dimension_numbers<[1], [0], [0], [1], [0, 0, 1, 1], [], []>} : vector<64x4xbf16>, vector<4x2xbf16>, vector<64x2xf32> -> vector<64x2xf32>
    %147 = vector.extract_strided_slice %0 {offsets = [7, 0], sizes = [1, 2], strides = [1, 1]} : vector<8x512xf32> to vector<1x2xf32>
    %148 = vector.broadcast %147 : vector<1x2xf32> to vector<64x2xf32>
    %149 = arith.addf %146, %148 : vector<64x2xf32>
    %cst_90 = arith.constant 5.000000e-01 : f32
    %150 = vector.broadcast %cst_90 : f32 to vector<64x2xf32>
    %151 = arith.mulf %150, %149 : vector<64x2xf32>
    %152 = math.tanh %151 : vector<64x2xf32>
    %cst_91 = arith.constant 1.000000e+00 : f32
    %153 = vector.broadcast %cst_91 : f32 to vector<64x2xf32>
    %154 = arith.addf %152, %153 : vector<64x2xf32>
    %cst_92 = arith.constant 5.000000e-01 : f32
    %155 = vector.broadcast %cst_92 : f32 to vector<64x2xf32>
    %156 = arith.mulf %155, %154 : vector<64x2xf32>
    %c0_93 = arith.constant 0 : index
    %c0_94 = arith.constant 0 : index
    %157 = vector.load %arg6[%c0_93, %c0_94] : memref<64x2xf32, #tpu.memory_space<vmem>>, vector<64x2xf32>
    tpu.vector_store %arg6[%c0_93, %c0_94], %156 {strides = array<i32>} : memref<64x2xf32, #tpu.memory_space<vmem>>, vector<64x2xf32>,
    return
  }
}

</mosaic_0001>

<bundles_post_ra>
// kernel: forward.1
= control target key start
LH: loop header
LB: loop body
LE: loop exit
PB: predicated region body
PF: predicated region fallthrough
CT: control target
= control target key end

     0   :  { %13 = vsyncpa [#allocation5], 0  ;;  %s2686_s0 = inlined_call_operand.vmem [shape: f32[16,64], index: 0, kind: input, shape index: {}]   ;;  %s2687_s1 = inlined_call_operand.hbm [shape: bf16[64,512], index: 1, kind: input, shape index: {}]   ;;  %s2688_s2 = inlined_call_operand.vmem [shape: bf16[256,256], index: 2, kind: input, shape index: {}]   ;;  %s2689_s3 = inlined_call_operand.vmem [shape: bf16[192,64], index: 3, kind: input, shape index: {}]   ;;  %s2690_s4 = inlined_call_operand.vmem [shape: bf16[128,32], index: 4, kind: input, shape index: {}]   ;;  %s2691_s5 = inlined_call_operand.hbm [shape: f32[8,512], index: 5, kind: input, shape index: {}]   ;;  %s2692_s6 = inlined_call_operand.vmem [shape: f32[64,2], index: 6, kind: output, shape index: {0}]   ;;  %s2693_s7 = inlined_call_operand.vmem [shape: f32[8,64], index: 7, kind: output, shape index: {1}]  }
   0x1   :  { %14 = vsyncpa [#allocation7], 0  ;;  %s2238_s24 = smov [#allocation4]  }
   0x2   :  { %s22_s25 = sshll.u32 %s2238_s24, 4  ;;  %s23_s25 = int_to_ptr.vmem [resolvable:$true] %s22_s25 }
   0x3   :  { %s2202_s26 = scalar_lea.vmem %s23_s25, 2048  ;;  %p2207_p1 = scmp.lt.s32.totalorder %s23_s25, %s23_s25 }
   0x4   :  { %p2203_p0 = scmp.ne.s32.totalorder %s23_s25, %s2202_s26  ;;  %p2208_p2 = scmp.lt.s32.totalorder %s2202_s26, %s2202_s26 }
   0x6   :  { %p2209_p3 = por %p2208_p2, %p2207_p1 }
   0x8   :  { %p2210_p4 = pnand %p2209_p3, %p2203_p0 }
   0xa   :  { %2213 = shalt.err (!%p2210_p4)
}
   0xb   :  { %s2239_s27 = smov 256   ;;  %s2240_s28 = smov 16  }
   0xc   :  { %28 = dma.hbm_to_vmem [thread:$0]  %s2687_s1, 2048, %s23_s25, [#allocation5], %s2239_s27, %s2239_s27, %s2240_s28  }
   0xd   :  { %s2241_s8 = smov [#allocation6]  }
   0xe   :  { %s41_s9 = sshll.u32 %s2241_s8, 4  ;;  %s42_s9 = int_to_ptr.vmem [resolvable:$true] %s41_s9 }
   0xf   :  { %s2222_s10 = scalar_lea.vmem %s42_s9, 512  ;;  %p2227_p6 = scmp.lt.s32.totalorder %s42_s9, %s42_s9 }
  0x10   :  { %p2223_p5 = scmp.ne.s32.totalorder %s42_s9, %s2222_s10  ;;  %p2228_p7 = scmp.lt.s32.totalorder %s2222_s10, %s2222_s10 }
  0x12   :  { %p2229_p8 = por %p2228_p7, %p2227_p6 }
  0x14   :  { %p2230_p9 = pnand %p2229_p8, %p2223_p5 }
  0x16   :  { %2233 = shalt.err (!%p2230_p9)
}
  0x17   :  { %44 = dma.hbm_to_vmem [thread:$0]  %s2691_s5, 512, %s42_s9, [#allocation7]  }
  0x18   :  { %2234 = dma.done.wait [#allocation5], 2048  }
  0x19   :  { %2235 = vsyncadd [#allocation5], 4294965248 }
  0x1a   :  { %2236 = dma.done.wait [#allocation7], 512  }
  0x1b   :  { %2237 = vsyncadd [#allocation7], 4294966784  ;;  %v2242_v0 = vmov 0   ;;  %v2071_v1 = vld [vmem:[#allocation4 + $0x64] ss:$16 sps:$4 sm:$0xff]   ;;  %v57_v18 = vld [vmem:[%s2686_s0 + $0x8] sm:$0xff]  ;;  %v75_v58 = vlaneseq }
  0x1c   :  { %207 = vmatprep.mubr.bf16.mxu0 %v2242_v0  ;;  %250 = vmatprep.mubr.bf16.mxu1 %v2242_v0  ;;  %v2073_v2 = vld [vmem:[#allocation4 + $0x6c] ss:$16 sps:$4 sm:$0xff]   ;;  %v2075_v3 = vld [vmem:[#allocation4 + $0x60] ss:$16 sps:$4 sm:$0xff]   ;;  %v2076_v4 = vld [vmem:[#allocation4 + $0x68] ss:$16 sps:$4 sm:$0xff]  }
  0x1d   :  { %183 = vmatprep.subr.bf16.mxu0 %v2071_v1  ;;  %226 = vmatprep.subr.bf16.mxu1 %v2073_v2  ;;  %v2077_v5 = vld [vmem:[#allocation4 + $0x44] ss:$16 sps:$4 sm:$0xff]   ;;  %v2079_v6 = vld [vmem:[#allocation4 + $0x4c] ss:$16 sps:$4 sm:$0xff]   ;;  %v2081_v7 = vld [vmem:[#allocation4 + $0x40] ss:$16 sps:$4 sm:$0xff]  }
  0x1e   :  { %184 = vmatpush1.bf16.msra.mxu0 %v2075_v3  ;;  %227 = vmatpush1.bf16.msra.mxu1 %v2076_v4  ;;  %v2082_v8 = vld [vmem:[#allocation4 + $0x48] ss:$16 sps:$4 sm:$0xff]   ;;  %v2083_v9 = vld [vmem:[#allocation4 + $0x24] ss:$16 sps:$4 sm:$0xff]   ;;  %v2085_v10 = vld [vmem:[#allocation4 + $0x2c] ss:$16 sps:$4 sm:$0xff]  }
  0x1f   :  { %185 = vmatprep.subr.bf16.mxu0 %v2077_v5  ;;  %228 = vmatprep.subr.bf16.mxu1 %v2079_v6  ;;  %v2087_v11 = vld [vmem:[#allocation4 + $0x20] ss:$16 sps:$4 sm:$0xff]   ;;  %v2088_v12 = vld [vmem:[#allocation4 + $0x28] ss:$16 sps:$4 sm:$0xff]   ;;  %v2089_v13 = vld [vmem:[#allocation4 + $0x4] ss:$16 sps:$4 sm:$0xff]  }
  0x20   :  { %v2091_v14 = vld [vmem:[#allocation4 + $0xc] ss:$16 sps:$4 sm:$0xff]   ;;  %v2093_v15 = vld [vmem:[#allocation4] ss:$16 sps:$4 sm:$0xff]   ;;  %v2094_v16 = vld [vmem:[#allocation4 + $0x8] ss:$16 sps:$4 sm:$0xff]  }
  0x21   :  { %v56_v17 = vld [vmem:[%s2686_s0] sm:$0xff]  ;;  %v2097_v19 = vld [vmem:[%s2688_s2 + $0x74] ss:$8 sps:$4 sm:$0xff]   ;;  %vm171_vm0 = vcmask 523264   ;;  %v2095_v21 = vld [vmem:[%s2688_s2 + $0x70] ss:$8 sps:$4 sm:$0xff]  }
  0x22   :  { %186 = vmatpush1.bf16.msra.mxu0 %v2081_v7  ;;  %229 = vmatpush1.bf16.msra.mxu1 %v2082_v8  ;;  %v58_v20 = vpack.c.bf16 %v57_v18, %v56_v17  ;;  %v2100_v22 = vld [vmem:[%s2688_s2 + $0x64] ss:$8 sps:$4 sm:$0xff]   ;;  %v2098_v23 = vld [vmem:[%s2688_s2 + $0x60] ss:$8 sps:$4 sm:$0xff]   ;;  %v2103_v24 = vld [vmem:[%s2688_s2 + $0x54] ss:$8 sps:$4 sm:$0xff]  }
  0x23   :  { %187 = vmatprep.subr.bf16.mxu0 %v2083_v9  ;;  %230 = vmatprep.subr.bf16.mxu1 %v2085_v10  ;;  %v2101_v25 = vld [vmem:[%s2688_s2 + $0x50] ss:$8 sps:$4 sm:$0xff]   ;;  %v2106_v26 = vld [vmem:[%s2688_s2 + $0x44] ss:$8 sps:$4 sm:$0xff]   ;;  %v2104_v27 = vld [vmem:[%s2688_s2 + $0x40] ss:$8 sps:$4 sm:$0xff]  }
  0x24   :  { %v2109_v28 = vld [vmem:[%s2688_s2 + $0x34] ss:$8 sps:$4 sm:$0xff]   ;;  %v2107_v29 = vld [vmem:[%s2688_s2 + $0x30] ss:$8 sps:$4 sm:$0xff]   ;;  %v2112_v30 = vld [vmem:[%s2688_s2 + $0x24] ss:$8 sps:$4 sm:$0xff]  }
  0x25   :  { %v2110_v31 = vld [vmem:[%s2688_s2 + $0x20] ss:$8 sps:$4 sm:$0xff]   ;;  %v2115_v32 = vld [vmem:[%s2688_s2 + $0x14] ss:$8 sps:$4 sm:$0xff]   ;;  %v2113_v33 = vld [vmem:[%s2688_s2 + $0x10] ss:$8 sps:$4 sm:$0xff]  }
  0x26   :  { %188 = vmatpush1.bf16.msra.mxu0 %v2087_v11  ;;  %231 = vmatpush1.bf16.msra.mxu1 %v2088_v12  ;;  %v2118_v34 = vld [vmem:[%s2688_s2 + $0x4] ss:$8 sps:$4 sm:$0xff]   ;;  %v2116_v35 = vld [vmem:[%s2688_s2] ss:$8 sps:$4 sm:$0xff]   ;;  %v2121_v36 = vld [vmem:[%s2688_s2 + $0xf4] ss:$8 sps:$4 sm:$0xff]  }
  0x27   :  { %189 = vmatprep.subr.bf16.mxu0 %v2089_v13  ;;  %232 = vmatprep.subr.bf16.mxu1 %v2091_v14  ;;  %v2119_v37 = vld [vmem:[%s2688_s2 + $0xf0] ss:$8 sps:$4 sm:$0xff]   ;;  %v2124_v38 = vld [vmem:[%s2688_s2 + $0xe4] ss:$8 sps:$4 sm:$0xff]   ;;  %v2122_v39 = vld [vmem:[%s2688_s2 + $0xe0] ss:$8 sps:$4 sm:$0xff]  }
  0x28   :  { %v2127_v40 = vld [vmem:[%s2688_s2 + $0xd4] ss:$8 sps:$4 sm:$0xff]   ;;  %v2125_v41 = vld [vmem:[%s2688_s2 + $0xd0] ss:$8 sps:$4 sm:$0xff]   ;;  %v2130_v42 = vld [vmem:[%s2688_s2 + $0xc4] ss:$8 sps:$4 sm:$0xff]  }
  0x29   :  { %v2128_v43 = vld [vmem:[%s2688_s2 + $0xc0] ss:$8 sps:$4 sm:$0xff]   ;;  %v2133_v44 = vld [vmem:[%s2688_s2 + $0xb4] ss:$8 sps:$4 sm:$0xff]   ;;  %v2131_v45 = vld [vmem:[%s2688_s2 + $0xb0] ss:$8 sps:$4 sm:$0xff]  }
  0x2a   :  { %190 = vmatpush1.bf16.msra.mxu0 %v2093_v15  ;;  %233 = vmatpush1.bf16.msra.mxu1 %v2094_v16  ;;  %v2136_v46 = vld [vmem:[%s2688_s2 + $0xa4] ss:$8 sps:$4 sm:$0xff]   ;;  %v2134_v47 = vld [vmem:[%s2688_s2 + $0xa0] ss:$8 sps:$4 sm:$0xff]   ;;  %v2139_v48 = vld [vmem:[%s2688_s2 + $0x94] ss:$8 sps:$4 sm:$0xff]  }
  0x2b   :  { %471 = vmatprep.subr.bf16.mxu0 %v2097_v19  ;;  %v2137_v49 = vld [vmem:[%s2688_s2 + $0x90] ss:$8 sps:$4 sm:$0xff]   ;;  %v2142_v50 = vld [vmem:[%s2688_s2 + $0x84] ss:$8 sps:$4 sm:$0xff]   ;;  %v2140_v51 = vld [vmem:[%s2688_s2 + $0x80] ss:$8 sps:$4 sm:$0xff]  }
  0x2c   :  { %v2143_v52 = vld [vmem:[%s2689_s3 + $0x38] sm:$0xff]   ;;  %v2243_v53 = vmov 0.0   ;;  %v2144_v54 = vld [vmem:[%s2689_s3 + $0x30] sm:$0xff]   ;;  %v2145_v55 = vld [vmem:[%s2689_s3 + $0x28] sm:$0xff]   ;;  %v2435_v59 = vshrl.u32 %v75_v58, 7  ;;  %vm2244_vm1 = vmmov 0  }
  0x2d   :  { %1730 = vmatmul.mubr.msk.bf16.vlgmr.msra.gmra.mxu0 %vm171_vm0, %v58_v20  ;;  %1731 = vmatmul.mubr.msk.bf16.vlgmr.msra.gmra.mxu1 %vm171_vm0, %v58_v20  ;;  %628 = vst.msk [vmem:[#allocation2] sm:$0xff] %vm171_vm0, %v2243_v53  ;;  %629 = vst.msk [vmem:[#allocation2 + $0x8] sm:$0xff] %vm171_vm0, %v2243_v53  ;;  %v2146_v56 = vld [vmem:[%s2689_s3 + $0x20] sm:$0xff]   ;;  %v2147_v57 = vld [vmem:[%s2689_s3 + $0x18] sm:$0xff]   ;;  %vm636_vm2 = vcmask 517120   ;;  %vm638_vm3 = vcmask 519170  }
  0x2e   :  { %472 = vmatpush1.bf16.msra.mxu0 %v2095_v21  ;;  %1888 = vmatprep.subr.bf16.mxu1 %v2243_v53  ;;  %630 = vst.msk [vmem:[#allocation2 + $0x10] sm:$0xff] %vm171_vm0, %v2243_v53  ;;  %631 = vst.msk [vmem:[#allocation2 + $0x18] sm:$0xff] %vm171_vm0, %v2243_v53  ;;  %v77_v60 = vsub.s32 0, %v2435_v59  ;;  %v53_v61 = vld [vmem:[#allocation6 + $0x8] sm:$0xff]  ;;  %v55_v62 = vld [vmem:[#allocation6 + $0x18] sm:$0xff]  ;;  %vm640_vm4 = vcmask 521220  }
  0x2f   :  { %473 = vmatprep.subr.bf16.mxu0 %v2100_v22  ;;  %632 = vst.msk [vmem:[#allocation2 + $0x20] sm:$0xff] %vm171_vm0, %v2243_v53  ;;  %633 = vst.msk [vmem:[#allocation2 + $0x28] sm:$0xff] %vm171_vm0, %v2243_v53  ;;  %1889 = vmatpush3.bf16.msra.mxu1 %v2143_v52  ;;  %v2438_v63 = vld [vmem:[#allocation6] sm:$0xff]  ;;  %v54_v1 = vld [vmem:[#allocation6 + $0x10] sm:$0xff]  ;;  %vm642_vm5 = vcmask 523270   ;;  %vm1237_vm10 = vcmask 261120  }
  0x30   :  { %634 = vst.msk [vmem:[#allocation2 + $0x30] sm:$0xff] %vm171_vm0, %v2243_v53  ;;  %635 = vst.msk [vmem:[#allocation2 + $0x38] sm:$0xff] %vm171_vm0, %v2243_v53  ;;  %1890 = vmatprep.subr.bf16.mxu1 %v2243_v53  ;;  %v82_v2 = vrot.slane %v53_v61, %v77_v60  ;;  %v90_v3 = vrot.slane %v55_v62, %v77_v60  ;;  %v78_v4 = vrot.slane %v2438_v63, %v77_v60 }
  0x31   :  { %v86_v6 = vrot.slane %v54_v1, %v77_v60  ;;  %1904 = vmatprep.mubr.msk.bf16.mxu1 %vm2244_vm1, %v2243_v53 }
  0x32   :  { %474 = vmatpush1.bf16.msra.mxu0 %v2098_v23 }
  0x33   :  { %475 = vmatprep.subr.bf16.mxu0 %v2103_v24  ;;  %1891 = vmatpush3.bf16.msra.mxu1 %v2144_v54 }
  0x34   :  { %1892 = vmatprep.subr.bf16.mxu1 %v2243_v53 }
  0x36   :  { %476 = vmatpush1.bf16.msra.mxu0 %v2101_v25 }
  0x37   :  { %477 = vmatprep.subr.bf16.mxu0 %v2106_v26  ;;  %1893 = vmatpush3.bf16.msra.mxu1 %v2145_v55 }
  0x38   :  { %1894 = vmatprep.subr.bf16.mxu1 %v2243_v53 }
  0x3a   :  { %478 = vmatpush1.bf16.msra.mxu0 %v2104_v27 }
  0x3b   :  { %479 = vmatprep.subr.bf16.mxu0 %v2109_v28  ;;  %1895 = vmatpush3.bf16.msra.mxu1 %v2146_v56 }
  0x3c   :  { %1896 = vmatprep.subr.bf16.mxu1 %v2243_v53 }
  0x3e   :  { %480 = vmatpush1.bf16.msra.mxu0 %v2107_v29 }
  0x3f   :  { %481 = vmatprep.subr.bf16.mxu0 %v2112_v30  ;;  %1897 = vmatpush3.bf16.msra.mxu1 %v2147_v57 }
  0x40   :  { %1898 = vmatprep.subr.bf16.mxu1 %v2243_v53 }
  0x42   :  { %482 = vmatpush1.bf16.msra.mxu0 %v2110_v31 }
  0x43   :  { %483 = vmatprep.subr.bf16.mxu0 %v2115_v32  ;;  %v2148_v32 = vld [vmem:[%s2689_s3 + $0x10] sm:$0xff]  }
  0x44   :  { %1899 = vmatpush3.bf16.msra.mxu1 %v2148_v32 }
  0x45   :  { %1900 = vmatprep.subr.bf16.mxu1 %v2243_v53 }
  0x46   :  { %484 = vmatpush1.bf16.msra.mxu0 %v2113_v33  ;;  %v2149_v33 = vld [vmem:[%s2689_s3 + $0x8] sm:$0xff]  }
  0x47   :  { %485 = vmatprep.subr.bf16.mxu0 %v2118_v34  ;;  %v2150_v34 = vld [vmem:[%s2689_s3] sm:$0xff]  }
  0x48   :  { %1901 = vmatpush3.bf16.msra.mxu1 %v2149_v33 }
  0x49   :  { %1902 = vmatprep.subr.bf16.mxu1 %v2243_v53 }
  0x4a   :  { %486 = vmatpush1.bf16.msra.mxu0 %v2116_v35  ;;  %v2456_v35 = vld [vmem:[%s2689_s3 + $0x58] sm:$0xff]  }
  0x4b   :  { %487 = vmatprep.subr.bf16.mxu0 %v2121_v36  ;;  %v2467_v36 = vld [vmem:[%s2689_s3 + $0x50] sm:$0xff]  }
  0x4c   :  { %1903 = vmatpush3.bf16.msra.mxu1 %v2150_v34 }
  0x4d   :  { %1908 = vmatprep.subr.bf16.mxu1 %v2243_v53 }
  0x4e   :  { %488 = vmatpush2.bf16.msra.mxu0 %v2119_v37  ;;  %v2474_v37 = vld [vmem:[%s2689_s3 + $0x48] sm:$0xff]  }
  0x4f   :  { %489 = vmatprep.subr.bf16.mxu0 %v2124_v38  ;;  %v2481_v38 = vld [vmem:[%s2689_s3 + $0x40] sm:$0xff]  }
  0x52   :  { %490 = vmatpush2.bf16.msra.mxu0 %v2122_v39  ;;  %v305_v39 = vsub.s32 1, %v2435_v59 }
  0x53   :  { %491 = vmatprep.subr.bf16.mxu0 %v2127_v40 }
  0x54   :  { %v310_v40 = vrot.slane %v53_v61, %v305_v39 }
  0x56   :  { %492 = vmatpush2.bf16.msra.mxu0 %v2125_v41 }
  0x57   :  { %493 = vmatprep.subr.bf16.mxu0 %v2130_v42  ;;  %v306_v42 = vrot.slane %v2438_v63, %v305_v39 }
  0x5a   :  { %494 = vmatpush2.bf16.msra.mxu0 %v2128_v43 }
  0x5b   :  { %495 = vmatprep.subr.bf16.mxu0 %v2133_v44 }
  0x5e   :  { %496 = vmatpush2.bf16.msra.mxu0 %v2131_v45 }
  0x5f   :  { %497 = vmatprep.subr.bf16.mxu0 %v2136_v46 }
  0x62   :  { %498 = vmatpush2.bf16.msra.mxu0 %v2134_v47 }
  0x63   :  { %499 = vmatprep.subr.bf16.mxu0 %v2139_v48 }
  0x66   :  { %500 = vmatpush2.bf16.msra.mxu0 %v2137_v49 }
  0x67   :  { %501 = vmatprep.subr.bf16.mxu0 %v2142_v50 }
  0x6a   :  { %502 = vmatpush2.bf16.msra.mxu0 %v2140_v51 }
  0x6b   :  { %1932 = vmatprep.subr.bf16.mxu0 %v2243_v53 }
  0xed   :  { %v209_v5 = vpop.f32.mrf.mxu0  ;;  %v252_v7 = vpop.f32.mrf.mxu1 }
  0xee   :  { %v210_v12 = vadd.f32 %v209_v5, %v78_v4  ;;  %v253_v13 = vadd.f32 %v252_v7, %v86_v6 }
  0xef   :  { %v211_v8 = vpop.f32.mrf.mxu0  ;;  %v254_v9 = vpop.f32.mrf.mxu1 }
  0xf0   :  { %v212_v10 = vadd.f32 %v211_v8, %v82_v2  ;;  %v255_v11 = vadd.f32 %v254_v9, %v90_v3  ;;  %v261_v24 = vmax.f32 %v210_v12, %v253_v13 }
  0xf1   :  { %v213_v14 = vpop.f32.mrf.mxu0  ;;  %v256_v15 = vpop.f32.mrf.mxu1 }
  0xf2   :  { %v214_v16 = vadd.f32 %v213_v14, %v78_v4  ;;  %v257_v17 = vadd.f32 %v256_v15, %v86_v6  ;;  %v262_v20 = vmax.f32 %v212_v10, %v255_v11  ;;  %v265_v29 = vmax.f32 %v261_v24, 0.0 }
  0xf3   :  { %v215_v18 = vpop.f32.mrf.mxu0  ;;  %v258_v19 = vpop.f32.mrf.mxu1 }
  0xf4   :  { %v263_v21 = vmax.f32 %v214_v16, %v257_v17  ;;  %v216_v22 = vadd.f32 %v215_v18, %v82_v2  ;;  %v259_v23 = vadd.f32 %v258_v19, %v90_v3  ;;  %v266_v27 = vmax.f32 %v262_v20, 0.0 }
  0xf6   :  { %v264_v25 = vmax.f32 %v216_v22, %v259_v23  ;;  %v267_v26 = vmax.f32 %v263_v21, 0.0 }
  0xf8   :  { %v268_v28 = vmax.f32 %v264_v25, 0.0  ;;  %v269_v31 = vpack.c.bf16 %v267_v26, %v265_v29 }
  0xfa   :  { %v270_v30 = vpack.c.bf16 %v268_v28, %v266_v27 }
  0xfc   :  { %503 = vmatprep.mubr.bf16.mxu0 %v270_v30 }
  0xfd   :  { %504 = vmatmul.mubr.bf16.vlgmr.msra.gmra.mxu0 %v269_v31 }
  0xfe   :  { %1940 = vmatprep.mubr.msk.bf16.mxu0 %vm2244_vm1, %v2243_v53  ;;  %1933 = vmatpush3.bf16.msra.mxu0 %v2456_v35 }
  0xff   :  { %1934 = vmatprep.subr.bf16.mxu0 %v2243_v53 }
 0x102   :  { %1935 = vmatpush3.bf16.msra.mxu0 %v2467_v36 }
 0x103   :  { %1936 = vmatprep.subr.bf16.mxu0 %v2243_v53 }
 0x106   :  { %1937 = vmatpush3.bf16.msra.mxu0 %v2474_v37 }
 0x107   :  { %1938 = vmatprep.subr.bf16.mxu0 %v2243_v53 }
 0x10a   :  { %1939 = vmatpush3.bf16.msra.mxu0 %v2481_v38 }
 0x10b   :  { %1956 = vmatprep.subr.bf16.mxu0 %v2243_v53 }
 0x1bd   :  { %v505_v41 = vpop.f32.mrf.mxu0 }
 0x1be   :  { %v506_v46 = vadd.f32 %v505_v41, %v306_v42 }
 0x1bf   :  { %v507_v43 = vpop.f32.mrf.mxu0 }
 0x1c0   :  { %v508_v44 = vadd.f32 %v507_v43, %v310_v40 }
 0x1c1   :  { %v509_v45 = vpop.f32.mrf.mxu0 }
 0x1c2   :  { %v514_v48 = vmax.f32 %v506_v46, %v508_v44  ;;  %v510_v49 = vadd.f32 %v509_v45, %v306_v42  ;;  %v2155_v46 = vld [vmem:[%s2690_s4 + $0x18] sm:$0xff]  }
 0x1c3   :  { %v511_v47 = vpop.f32.mrf.mxu0 }
 0x1c4   :  { %v512_v50 = vadd.f32 %v511_v47, %v310_v40  ;;  %v516_v52 = vmax.f32 %v514_v48, 0.0 }
 0x1c6   :  { %v515_v51 = vmax.f32 %v510_v49, %v512_v50 }
 0x1c8   :  { %v517_v54 = vmax.f32 %v515_v51, 0.0 }
 0x1ca   :  { %v534_v55 = vpack.c.bf16 %v517_v54, %v516_v52 }
 0x1cc   :  { %1905 = vmatmul.mubr.bf16.vlgmr.msra.gmra.mxu1 %v534_v55  ;;  %v2157_v55 = vld [vmem:[%s2690_s4 + $0x8] sm:$0xff]  }
 0x1cd   :  { %1909 = vmatpush3.bf16.msra.mxu1 %v2456_v35  ;;  %1916 = vmatprep.mubr.msk.bf16.mxu1 %vm2244_vm1, %v2243_v53 }
 0x1ce   :  { %1910 = vmatprep.subr.bf16.mxu1 %v2243_v53 }
 0x1d1   :  { %1911 = vmatpush3.bf16.msra.mxu1 %v2467_v36 }
 0x1d2   :  { %1912 = vmatprep.subr.bf16.mxu1 %v2243_v53 }
 0x1d5   :  { %1913 = vmatpush3.bf16.msra.mxu1 %v2474_v37 }
 0x1d6   :  { %1914 = vmatprep.subr.bf16.mxu1 %v2243_v53 }
 0x1d9   :  { %1915 = vmatpush3.bf16.msra.mxu1 %v2481_v38 }
 0x1da   :  { %1920 = vmatprep.subr.bf16.mxu1 %v2243_v53 }
 0x1dc   :  { %1917 = vmatmul.mubr.bf16.vlgmr.msra.gmra.mxu1 %v2242_v0  ;;  %v537_v0 = vsub.s32 2, %v2435_v59 }
 0x1dd   :  { %1921 = vmatpush3.bf16.msra.mxu1 %v2456_v35  ;;  %1928 = vmatprep.mubr.msk.bf16.mxu1 %vm2244_vm1, %v2243_v53 }
 0x1de   :  { %1922 = vmatprep.subr.bf16.mxu1 %v2243_v53  ;;  %v538_v56 = vrot.slane %v2438_v63, %v537_v0  ;;  %v2158_v0 = vld [vmem:[%s2690_s4] sm:$0xff]  }
 0x1e1   :  { %1923 = vmatpush3.bf16.msra.mxu1 %v2467_v36 }
 0x1e2   :  { %1924 = vmatprep.subr.bf16.mxu1 %v2243_v53 }
 0x1e5   :  { %1925 = vmatpush3.bf16.msra.mxu1 %v2474_v37 }
 0x1e6   :  { %1926 = vmatprep.subr.bf16.mxu1 %v2243_v53 }
 0x1e9   :  { %1927 = vmatpush3.bf16.msra.mxu1 %v2481_v38 }
 0x1ea   :  { %1944 = vmatprep.subr.bf16.mxu1 %v2243_v53 }
 0x28c   :  { %v621_v57 = vpop.f32.mrf.mxu1 }
 0x28d   :  { %v622_v58 = vadd.f32 %v621_v57, %v538_v56 }
 0x28e   :  { %v1906_v60 = vpop.f32.mrf.mxu1 }
 0x28f   :  { %637 = vst.msk [vmem:[#allocation2] sm:$0x3] %vm636_vm2, %v622_v58 }
 0x290   :  { %639 = vst.msk [vmem:[#allocation2 + $0x6] sm:$0xc] %vm638_vm3, %v622_v58  ;;  %v624_v61 = vpop.f32.mrf.mxu1 }
 0x291   :  { %641 = vst.msk [vmem:[#allocation2 + $0xc] sm:$0x30] %vm640_vm4, %v622_v58  ;;  %v625_v62 = vadd.f32 %v624_v61, %v538_v56 }
 0x292   :  { %643 = vst.msk [vmem:[#allocation2 + $0x12] sm:$0xc0] %vm642_vm5, %v622_v58  ;;  %v1907_v1 = vpop.f32.mrf.mxu1 }
 0x293   :  { %644 = vst.msk [vmem:[#allocation2 + $0x20] sm:$0x3] %vm636_vm2, %v625_v62  ;;  %v2159_v1 = vld [vmem:[%s2690_s4 + $0x28] sm:$0xff]  }
 0x294   :  { %645 = vst.msk [vmem:[#allocation2 + $0x26] sm:$0xc] %vm638_vm3, %v625_v62 }
 0x295   :  { %646 = vst.msk [vmem:[#allocation2 + $0x2c] sm:$0x30] %vm640_vm4, %v625_v62  ;;  %vm1479_vm4 = vcmask 1043456  }
 0x296   :  { %647 = vst.msk [vmem:[#allocation2 + $0x32] sm:$0xc0] %vm642_vm5, %v625_v62  ;;  %v656_v2 = vld [vmem:[#allocation2] sm:$0xff] }
 0x297   :  { %v727_v10 = vld [vmem:[#allocation2 + $0x8] sm:$0xff] }
 0x298   :  { %v775_v18 = vld [vmem:[#allocation2 + $0x10] sm:$0xff] }
 0x299   :  { %v823_v26 = vld [vmem:[#allocation2 + $0x18] sm:$0xff] }
 0x29a   :  { %v871_v34 = vld [vmem:[#allocation2 + $0x20] sm:$0xff] }
 0x29c   :  { %v718_v3 = vpop.f32.mrf.mxu1 }
 0x29d   :  { %v724_v4 = vadd.f32 %v718_v3, %v656_v2  ;;  %v967_v2 = vld [vmem:[#allocation2 + $0x30] sm:$0xff] }
 0x29e   :  { %v1918_v5 = vpop.f32.mrf.mxu1 }
 0x29f   :  { %2162 = vtanh.f32 %v724_v4 }
 0x2a0   :  { %v721_v6 = vpop.f32.mrf.mxu1 }
 0x2a2   :  { %v1919_v7 = vpop.f32.mrf.mxu1 }
 0x2ac   :  { %v2163_v8 = vpop.eup %2162 }
 0x2ad   :  { %726 = vst.msk [vmem:[#allocation3] sm:$0xff] %vm171_vm0, %v2163_v8  ;;  %v728_v9 = vpack.c.bf16 %v2163_v8, %v2163_v8  ;;  %v1086_v8 = vsub.s32 3, %v2435_v59 }
 0x2af   :  { %1929 = vmatmul.mubr.msk.bf16.vlgmr.msra.gmra.mxu1 %vm171_vm0, %v728_v9 }
 0x2b0   :  { %1945 = vmatpush3.bf16.msra.mxu1 %v2456_v35  ;;  %1952 = vmatprep.mubr.msk.bf16.mxu1 %vm2244_vm1, %v2243_v53 }
 0x2b1   :  { %1946 = vmatprep.subr.bf16.mxu1 %v2243_v53 }
 0x2b4   :  { %1947 = vmatpush3.bf16.msra.mxu1 %v2467_v36 }
 0x2b5   :  { %1948 = vmatprep.subr.bf16.mxu1 %v2243_v53 }
 0x2b8   :  { %1949 = vmatpush3.bf16.msra.mxu1 %v2474_v37 }
 0x2b9   :  { %1950 = vmatprep.subr.bf16.mxu1 %v2243_v53 }
 0x2bc   :  { %1951 = vmatpush3.bf16.msra.mxu1 %v2481_v38 }
 0x2bd   :  { %1968 = vmatprep.subr.bf16.mxu1 %v2243_v53 }
 0x36f   :  { %v766_v11 = vpop.f32.mrf.mxu1 }
 0x370   :  { %v772_v12 = vadd.f32 %v766_v11, %v727_v10  ;;  %v2590_v10 = vrot.slane %v2438_v63, %v1086_v8 }
 0x371   :  { %v1930_v13 = vpop.f32.mrf.mxu1 }
 0x372   :  { %2164 = vtanh.f32 %v772_v12  ;;  %v2160_v13 = vld [vmem:[%s2690_s4 + $0x20] sm:$0xff]  }
 0x373   :  { %v769_v14 = vpop.f32.mrf.mxu1 }
 0x375   :  { %v1931_v15 = vpop.f32.mrf.mxu1 }
 0x37f   :  { %v2165_v16 = vpop.eup %2164 }
 0x380   :  { %774 = vst.msk [vmem:[#allocation3 + $0x8] sm:$0xff] %vm171_vm0, %v2165_v16  ;;  %v776_v17 = vpack.c.bf16 %v2165_v16, %v2165_v16 }
 0x382   :  { %1941 = vmatmul.mubr.msk.bf16.vlgmr.msra.gmra.mxu0 %vm171_vm0, %v776_v17 }
 0x383   :  { %1957 = vmatpush3.bf16.msra.mxu0 %v2456_v35  ;;  %1964 = vmatprep.mubr.msk.bf16.mxu0 %vm2244_vm1, %v2243_v53 }
 0x384   :  { %1958 = vmatprep.subr.bf16.mxu0 %v2243_v53 }
 0x387   :  { %1959 = vmatpush3.bf16.msra.mxu0 %v2467_v36  ;;  %v1065_v51 = vld [vmem:[#allocation3 + $0x8] sm:$0xff] }
 0x388   :  { %1960 = vmatprep.subr.bf16.mxu0 %v2243_v53 }
 0x38b   :  { %1961 = vmatpush3.bf16.msra.mxu0 %v2474_v37 }
 0x38c   :  { %1962 = vmatprep.subr.bf16.mxu0 %v2243_v53 }
 0x38f   :  { %1963 = vmatpush3.bf16.msra.mxu0 %v2481_v38 }
 0x390   :  { %1980 = vmatprep.subr.bf16.mxu0 %v2243_v53 }
 0x442   :  { %v814_v19 = vpop.f32.mrf.mxu0 }
 0x443   :  { %v820_v20 = vadd.f32 %v814_v19, %v775_v18 }
 0x444   :  { %v1942_v21 = vpop.f32.mrf.mxu0 }
 0x445   :  { %2166 = vtanh.f32 %v820_v20 }
 0x446   :  { %v817_v22 = vpop.f32.mrf.mxu0 }
 0x448   :  { %v1943_v23 = vpop.f32.mrf.mxu0 }
 0x452   :  { %v2167_v24 = vpop.eup %2166 }
 0x453   :  { %822 = vst.msk [vmem:[#allocation3 + $0x10] sm:$0xff] %vm171_vm0, %v2167_v24  ;;  %v824_v25 = vpack.c.bf16 %v2167_v24, %v2167_v24 }
 0x455   :  { %1953 = vmatmul.mubr.msk.bf16.vlgmr.msra.gmra.mxu1 %vm171_vm0, %v824_v25 }
 0x456   :  { %1969 = vmatpush3.bf16.msra.mxu1 %v2456_v35  ;;  %1976 = vmatprep.mubr.msk.bf16.mxu1 %vm2244_vm1, %v2243_v53 }
 0x457   :  { %1970 = vmatprep.subr.bf16.mxu1 %v2243_v53 }
 0x45a   :  { %1971 = vmatpush3.bf16.msra.mxu1 %v2467_v36  ;;  %v1066_v58 = vld [vmem:[#allocation3 + $0x10] sm:$0xff] }
 0x45b   :  { %1972 = vmatprep.subr.bf16.mxu1 %v2243_v53 }
 0x45e   :  { %1973 = vmatpush3.bf16.msra.mxu1 %v2474_v37 }
 0x45f   :  { %1974 = vmatprep.subr.bf16.mxu1 %v2243_v53 }
 0x462   :  { %1975 = vmatpush3.bf16.msra.mxu1 %v2481_v38 }
 0x463   :  { %1992 = vmatprep.subr.bf16.mxu1 %v2243_v53 }
 0x515   :  { %v862_v27 = vpop.f32.mrf.mxu1 }
 0x516   :  { %v868_v28 = vadd.f32 %v862_v27, %v823_v26 }
 0x517   :  { %v1954_v29 = vpop.f32.mrf.mxu1 }
 0x518   :  { %2168 = vtanh.f32 %v868_v28 }
 0x519   :  { %v865_v30 = vpop.f32.mrf.mxu1 }
 0x51b   :  { %v1955_v31 = vpop.f32.mrf.mxu1 }
 0x51c   :  { %v1015_v31 = vld [vmem:[#allocation2 + $0x38] sm:$0xff] }
 0x525   :  { %v2169_v32 = vpop.eup %2168 }
 0x526   :  { %870 = vst.msk [vmem:[#allocation3 + $0x18] sm:$0xff] %vm171_vm0, %v2169_v32  ;;  %v872_v33 = vpack.c.bf16 %v2169_v32, %v2169_v32 }
 0x528   :  { %1965 = vmatmul.mubr.msk.bf16.vlgmr.msra.gmra.mxu0 %vm171_vm0, %v872_v33 }
 0x529   :  { %1981 = vmatpush3.bf16.msra.mxu0 %v2456_v35  ;;  %1988 = vmatprep.mubr.msk.bf16.mxu0 %vm2244_vm1, %v2243_v53 }
 0x52a   :  { %1982 = vmatprep.subr.bf16.mxu0 %v2243_v53 }
 0x52d   :  { %1983 = vmatpush3.bf16.msra.mxu0 %v2467_v36  ;;  %v1067_v56 = vld [vmem:[#allocation3 + $0x18] sm:$0xff] }
 0x52e   :  { %1984 = vmatprep.subr.bf16.mxu0 %v2243_v53  ;;  %v1081_v60 = vpack.c.bf16 %v1067_v56, %v1066_v58 }
 0x531   :  { %1985 = vmatpush3.bf16.msra.mxu0 %v2474_v37 }
 0x532   :  { %1986 = vmatprep.subr.bf16.mxu0 %v2243_v53 }
 0x535   :  { %1987 = vmatpush3.bf16.msra.mxu0 %v2481_v38 }
 0x536   :  { %2004 = vmatprep.subr.bf16.mxu0 %v2155_v46 }
 0x5e8   :  { %v910_v39 = vpop.f32.mrf.mxu0 }
 0x5e9   :  { %v916_v40 = vadd.f32 %v910_v39, %v871_v34 }
 0x5ea   :  { %v1966_v41 = vpop.f32.mrf.mxu0 }
 0x5eb   :  { %2170 = vtanh.f32 %v916_v40 }
 0x5ec   :  { %v913_v42 = vpop.f32.mrf.mxu0 }
 0x5ee   :  { %v1967_v43 = vpop.f32.mrf.mxu0 }
 0x5f8   :  { %v2171_v44 = vpop.eup %2170 }
 0x5f9   :  { %918 = vst.msk [vmem:[#allocation3 + $0x20] sm:$0xff] %vm171_vm0, %v2171_v44  ;;  %v920_v45 = vpack.c.bf16 %v2171_v44, %v2171_v44 }
 0x5fb   :  { %1977 = vmatmul.mubr.msk.bf16.vlgmr.msra.gmra.mxu1 %vm171_vm0, %v920_v45  ;;  %v2161_v45 = vld [vmem:[%s2690_s4 + $0x30] sm:$0xff]  }
 0x5fc   :  { %1993 = vmatpush3.bf16.msra.mxu1 %v2456_v35  ;;  %2000 = vmatprep.mubr.msk.bf16.mxu1 %vm2244_vm1, %v2243_v53  ;;  %v919_v35 = vld [vmem:[#allocation2 + $0x28] sm:$0xff]  ;;  %vm1355_vm1 = vcmask 130048  }
 0x5fd   :  { %1994 = vmatprep.subr.bf16.mxu1 %v2243_v53 }
 0x600   :  { %1995 = vmatpush3.bf16.msra.mxu1 %v2467_v36  ;;  %v1068_v61 = vld [vmem:[#allocation3 + $0x20] sm:$0xff] }
 0x601   :  { %1996 = vmatprep.subr.bf16.mxu1 %v2243_v53 }
 0x604   :  { %1997 = vmatpush3.bf16.msra.mxu1 %v2474_v37 }
 0x605   :  { %1998 = vmatprep.subr.bf16.mxu1 %v2243_v53  ;;  %v1064_v53 = vld [vmem:[#allocation3] sm:$0xff] }
 0x606   :  { %v1080_v54 = vpack.c.bf16 %v1065_v51, %v1064_v53 }
 0x608   :  { %1999 = vmatpush3.bf16.msra.mxu1 %v2481_v38  ;;  %v2156_v38 = vld [vmem:[%s2690_s4 + $0x10] sm:$0xff]  }
 0x609   :  { %2020 = vmatprep.subr.bf16.mxu1 %v2159_v1 }
 0x6bb   :  { %v958_v47 = vpop.f32.mrf.mxu1 }
 0x6bc   :  { %v964_v48 = vadd.f32 %v958_v47, %v919_v35 }
 0x6bd   :  { %v1978_v49 = vpop.f32.mrf.mxu1 }
 0x6be   :  { %2172 = vtanh.f32 %v964_v48  ;;  %v1223_v48 = vsub.s32 4, %v2435_v59 }
 0x6bf   :  { %v961_v50 = vpop.f32.mrf.mxu1 }
 0x6c0   :  { %v1224_v50 = vrot.slane %v2438_v63, %v1223_v48 }
 0x6c1   :  { %v1979_v36 = vpop.f32.mrf.mxu1 }
 0x6cb   :  { %v2173_v52 = vpop.eup %2172 }
 0x6cc   :  { %966 = vst.msk [vmem:[#allocation3 + $0x28] sm:$0xff] %vm171_vm0, %v2173_v52  ;;  %v968_v37 = vpack.c.bf16 %v2173_v52, %v2173_v52 }
 0x6ce   :  { %1989 = vmatmul.mubr.msk.bf16.vlgmr.msra.gmra.mxu0 %vm171_vm0, %v968_v37 }
 0x6cf   :  { %2005 = vmatpush3.bf16.msra.mxu0 %v2155_v46  ;;  %2012 = vmatprep.mubr.msk.bf16.mxu0 %vm171_vm0, %v1080_v54 }
 0x6d0   :  { %2006 = vmatprep.subr.bf16.mxu0 %v2156_v38 }
 0x6d3   :  { %2007 = vmatpush3.bf16.msra.mxu0 %v2156_v38  ;;  %v1069_v57 = vld [vmem:[#allocation3 + $0x28] sm:$0xff] }
 0x6d4   :  { %2008 = vmatprep.subr.bf16.mxu0 %v2157_v55  ;;  %v1082_v62 = vpack.c.bf16 %v1069_v57, %v1068_v61 }
 0x6d7   :  { %2009 = vmatpush3.bf16.msra.mxu0 %v2157_v55 }
 0x6d8   :  { %2010 = vmatprep.subr.bf16.mxu0 %v2158_v0 }
 0x6db   :  { %2011 = vmatpush3.bf16.msra.mxu0 %v2158_v0 }
 0x6de   :  { %2013 = vmatmul.mubr.msk.bf16.vlgmr.msra.gmra.mxu0 %vm171_vm0, %v1081_v60 }
 0x6df   :  { %2016 = vmatprep.mubr.msk.bf16.mxu0 %vm171_vm0, %v1082_v62 }
 0x78e   :  { %v1006_v3 = vpop.f32.mrf.mxu0 }
 0x78f   :  { %v1012_v4 = vadd.f32 %v1006_v3, %v967_v2 }
 0x790   :  { %v1990_v5 = vpop.f32.mrf.mxu0 }
 0x791   :  { %2174 = vtanh.f32 %v1012_v4 }
 0x792   :  { %v1009_v6 = vpop.f32.mrf.mxu0 }
 0x794   :  { %v1991_v7 = vpop.f32.mrf.mxu0 }
 0x79e   :  { %v2175_v9 = vpop.eup %2174  ;;  %v2014_v11 = vpop.f32.mrf.mxu0 }
 0x79f   :  { %1014 = vst.msk [vmem:[#allocation3 + $0x30] sm:$0xff] %vm171_vm0, %v2175_v9  ;;  %v1016_v12 = vpack.c.bf16 %v2175_v9, %v2175_v9  ;;  %v1167_v16 = vadd.f32 %v2014_v11, %v2590_v10 }
 0x7a0   :  { %v1158_v14 = vpop.f32.mrf.mxu0 }
 0x7a1   :  { %v1159_v15 = vadd.f32 %v1158_v14, %v2590_v10  ;;  %2001 = vmatmul.mubr.msk.bf16.vlgmr.msra.gmra.mxu1 %vm171_vm0, %v1016_v12  ;;  %v1199_v23 = vmul.f32 0.01, %v1167_v16  ;;  %vm1191_vm8 = vcmp.ge.f32.partialorder %v1167_v16, 0.0 }
 0x7a2   :  { %v2015_v17 = vpop.f32.mrf.mxu0  ;;  %2021 = vmatpush3.bf16.msra.mxu1 %v2159_v1 }
 0x7a3   :  { %v1170_v18 = vadd.f32 %v2015_v17, %v2590_v10  ;;  %2022 = vmatprep.subr.bf16.mxu1 %v2160_v13  ;;  %v1197_v20 = vmul.f32 0.01, %v1159_v15  ;;  %vm1189_vm7 = vcmp.ge.f32.partialorder %v1159_v15, 0.0  ;;  %v1207_v28 = vsel %vm1191_vm8, %v1167_v16, %v1199_v23 }
 0x7a4   :  { %v1161_v19 = vpop.f32.mrf.mxu0 }
 0x7a5   :  { %vm1192_vm6 = vcmp.ge.f32.partialorder %v1170_v18, 0.0  ;;  %v1200_v21 = vmul.f32 0.01, %v1170_v18  ;;  %v1162_v22 = vadd.f32 %v1161_v19, %v2590_v10  ;;  %v1205_v26 = vsel %vm1189_vm7, %v1159_v15, %v1197_v20 }
 0x7a6   :  { %2023 = vmatpush3.bf16.msra.mxu1 %v2160_v13  ;;  %v1070_v42 = vld [vmem:[#allocation3 + $0x30] sm:$0xff] }
 0x7a7   :  { %vm1190_vm9 = vcmp.ge.f32.partialorder %v1162_v22, 0.0  ;;  %v1198_v24 = vmul.f32 0.01, %v1162_v22  ;;  %v1208_v25 = vsel %vm1192_vm6, %v1170_v18, %v1200_v21  ;;  %2032 = vmatprep.subr.bf16.mxu1 %v2161_v45  ;;  %v1457_v18 = vld [vmem:[%s2690_s4 + $0x38] sm:$0xf] }
 0x7a8   :  { %v1218_v30 = vpack.c.bf16 %v1208_v25, %v1207_v28  ;;  %2062 = vmatprep.subr.msk.bf16.mxu0 %vm1479_vm4, %v1457_v18  ;;  %v1481_v19 = vsel %vm1479_vm4, %v1457_v18, 0  ;;  %v1347_v25 = vsub.s32 5, %v2435_v59 }
 0x7a9   :  { %v1206_v27 = vsel %vm1190_vm9, %v1162_v22, %v1198_v24  ;;  %2043 = vmatpush3.bf16.msra.mxu0 %v1481_v19 }
 0x7aa   :  { %v1217_v29 = vpack.c.bf16 %v1206_v27, %v1205_v26 }
 0x7ac   :  { %2024 = vmatprep.mubr.msk.bf16.mxu1 %vm1237_vm10, %v1217_v29 }
 0x7ad   :  { %2025 = vmatmul.mubr.msk.bf16.vlgmr.msra.gmra.mxu1 %vm1237_vm10, %v1218_v30 }
 0x7ae   :  { %2033 = vmatpush3.bf16.msra.mxu1 %v2161_v45 }
 0x861   :  { %v1054_v32 = vpop.f32.mrf.mxu1 }
 0x862   :  { %v1060_v33 = vadd.f32 %v1054_v32, %v1015_v31  ;;  %v1348_v32 = vrot.slane %v2438_v63, %v1347_v25 }
 0x863   :  { %v2002_v34 = vpop.f32.mrf.mxu1 }
 0x864   :  { %2176 = vtanh.f32 %v1060_v33 }
 0x865   :  { %v1057_v39 = vpop.f32.mrf.mxu1 }
 0x867   :  { %v2003_v40 = vpop.f32.mrf.mxu1 }
 0x86d   :  { %v2026_v46 = vpop.f32.mrf.mxu1 }
 0x86e   :  { %v1293_v7 = vadd.f32 %v2026_v46, %v1224_v50 }
 0x86f   :  { %v1284_v35 = vpop.f32.mrf.mxu1 }
 0x870   :  { %v1285_v54 = vadd.f32 %v1284_v35, %v1224_v50  ;;  %v1325_v14 = vmul.f32 0.01, %v1293_v7  ;;  %vm1317_vm3 = vcmp.ge.f32.partialorder %v1293_v7, 0.0 }
 0x871   :  { %v2177_v41 = vpop.eup %2176  ;;  %v2027_v47 = vpop.f32.mrf.mxu1 }
 0x872   :  { %1062 = vst.msk [vmem:[#allocation3 + $0x38] sm:$0xff] %vm171_vm0, %v2177_v41  ;;  %1063 = vst.msk [vmem:[%s2693_s7] sm:$0xff] %vm171_vm0, %v2177_v41  ;;  %v1323_v62 = vmul.f32 0.01, %v1285_v54  ;;  %v1296_v2 = vadd.f32 %v2027_v47, %v1224_v50  ;;  %v1333_v16 = vsel %vm1317_vm3, %v1293_v7, %v1325_v14 }
 0x873   :  { %v1287_v49 = vpop.f32.mrf.mxu1 }
 0x874   :  { %v1288_v51 = vadd.f32 %v1287_v49, %v1224_v50  ;;  %vm1318_vm2 = vcmp.ge.f32.partialorder %v1296_v2, 0.0 }
 0x876   :  { %v1324_v0 = vmul.f32 0.01, %v1288_v51  ;;  %vm1316_vm12 = vcmp.ge.f32.partialorder %v1288_v51, 0.0 }
 0x878   :  { %v1332_v4 = vsel %vm1316_vm12, %v1288_v51, %v1324_v0 }
 0x879   :  { %v1071_v43 = vld [vmem:[#allocation3 + $0x38] sm:$0xff] }
 0x87a   :  { %v1083_v44 = vpack.c.bf16 %v1071_v43, %v1070_v42 }
 0x87c   :  { %2017 = vmatmul.mubr.msk.bf16.gmra.mxu0 %vm171_vm0, %v1083_v44  ;;  %vm1315_vm0 = vcmp.ge.f32.partialorder %v1285_v54, 0.0 }
 0x87d   :  { %v1331_v11 = vsel %vm1315_vm0, %v1285_v54, %v1323_v62 }
 0x87e   :  { %v1341_v13 = vpack.c.bf16 %v1332_v4, %v1331_v11 }
 0x93c   :  { %v2018_v36 = vpop.f32.mrf.mxu0 }
 0x93d   :  { %v1183_v53 = vadd.f32 %v2018_v36, %v2590_v10 }
 0x93e   :  { %v1174_v52 = vpop.f32.mrf.mxu0 }
 0x93f   :  { %v1175_v37 = vadd.f32 %v1174_v52, %v2590_v10  ;;  %v1203_v61 = vmul.f32 0.01, %v1183_v53  ;;  %vm1195_vm14 = vcmp.ge.f32.partialorder %v1183_v53, 0.0 }
 0x940   :  { %v2019_v38 = vpop.f32.mrf.mxu0 }
 0x941   :  { %v1186_v55 = vadd.f32 %v2019_v38, %v2590_v10  ;;  %v1201_v57 = vmul.f32 0.01, %v1175_v37  ;;  %vm1193_vm13 = vcmp.ge.f32.partialorder %v1175_v37, 0.0  ;;  %v1211_v8 = vsel %vm1195_vm14, %v1183_v53, %v1203_v61 }
 0x942   :  { %v1177_v56 = vpop.f32.mrf.mxu0  ;;  %vm1594_vm14 = vcmask 1041408  }
 0x943   :  { %vm1196_vm11 = vcmp.ge.f32.partialorder %v1186_v55, 0.0  ;;  %v1204_v58 = vmul.f32 0.01, %v1186_v55  ;;  %v1178_v60 = vadd.f32 %v1177_v56, %v2590_v10  ;;  %v1209_v5 = vsel %vm1193_vm13, %v1175_v37, %v1201_v57  ;;  %v1572_v57 = vld [vmem:[%s2690_s4 + $0x3c] sm:$0x3] }
 0x944   :  { %v1326_v10 = vmul.f32 0.01, %v1296_v2  ;;  %vm1466_vm13 = vcmask 64512   ;;  %2063 = vmatprep.subr.msk.bf16.mxu1 %vm1594_vm14, %v1572_v57 }
 0x945   :  { %vm1194_vm15 = vcmp.ge.f32.partialorder %v1178_v60, 0.0  ;;  %v1202_v1 = vmul.f32 0.01, %v1178_v60  ;;  %v1212_v3 = vsel %vm1196_vm11, %v1186_v55, %v1204_v58  ;;  %v1596_v58 = vsel %vm1594_vm14, %v1572_v57, 0 }
 0x946   :  { %v1220_v12 = vpack.c.bf16 %v1212_v3, %v1211_v8  ;;  %v1334_v15 = vsel %vm1318_vm2, %v1296_v2, %v1326_v10  ;;  %v1464_v3 = vsub.s32 6, %v2435_v59 }
 0x947   :  { %v1210_v6 = vsel %vm1194_vm15, %v1178_v60, %v1202_v1  ;;  %v1342_v17 = vpack.c.bf16 %v1334_v15, %v1333_v16 }
 0x948   :  { %v1219_v9 = vpack.c.bf16 %v1210_v6, %v1209_v5  ;;  %v1465_v11 = vrot.slane %v2438_v63, %v1464_v3 }
 0x94a   :  { %2028 = vmatprep.mubr.msk.bf16.mxu1 %vm1237_vm10, %v1219_v9 }
 0x94b   :  { %2029 = vmatmul.mubr.msk.bf16.gmra.mxu1 %vm1237_vm10, %v1220_v12 }
 0x94c   :  { %2034 = vmatprep.mubr.msk.bf16.mxu1 %vm1355_vm1, %v1341_v13 }
 0x953   :  { %2035 = vmatmul.mubr.msk.bf16.vlgmr.msra.gmra.mxu1 %vm1355_vm1, %v1342_v17 }
 0x954   :  { %2053 = vmatpush3.bf16.msra.mxu1 %v1596_v58 }
 0xa0b   :  { %v2030_v20 = vpop.f32.mrf.mxu1 }
 0xa0c   :  { %v1309_v23 = vadd.f32 %v2030_v20, %v1224_v50 }
 0xa0d   :  { %v1300_v21 = vpop.f32.mrf.mxu1 }
 0xa0e   :  { %v1301_v22 = vadd.f32 %v1300_v21, %v1224_v50  ;;  %v1329_v31 = vmul.f32 0.01, %v1309_v23  ;;  %vm1321_vm7 = vcmp.ge.f32.partialorder %v1309_v23, 0.0 }
 0xa0f   :  { %v2031_v24 = vpop.f32.mrf.mxu1 }
 0xa10   :  { %v1312_v26 = vadd.f32 %v2031_v24, %v1224_v50  ;;  %v1327_v28 = vmul.f32 0.01, %v1301_v22  ;;  %vm1319_vm6 = vcmp.ge.f32.partialorder %v1301_v22, 0.0  ;;  %v1337_v44 = vsel %vm1321_vm7, %v1309_v23, %v1329_v31 }
 0xa11   :  { %v1303_v27 = vpop.f32.mrf.mxu1  ;;  %vm1581_vm7 = vcmask 31744  }
 0xa12   :  { %vm1322_vm5 = vcmp.ge.f32.partialorder %v1312_v26, 0.0  ;;  %v1330_v29 = vmul.f32 0.01, %v1312_v26  ;;  %v1304_v30 = vadd.f32 %v1303_v27, %v1224_v50  ;;  %v1335_v41 = vsel %vm1319_vm6, %v1301_v22, %v1327_v28 }
 0xa13   :  { %v2036_v33 = vpop.f32.mrf.mxu1 }
 0xa14   :  { %vm1320_vm8 = vcmp.ge.f32.partialorder %v1304_v30, 0.0  ;;  %v1328_v34 = vmul.f32 0.01, %v1304_v30  ;;  %v1338_v39 = vsel %vm1322_vm5, %v1312_v26, %v1330_v29  ;;  %v1411_v46 = vadd.f32 %v2036_v33, %v1348_v32 }
 0xa15   :  { %v1402_v40 = vpop.f32.mrf.mxu1  ;;  %v1344_v47 = vpack.c.bf16 %v1338_v39, %v1337_v44 }
 0xa16   :  { %v1336_v42 = vsel %vm1320_vm8, %v1304_v30, %v1328_v34  ;;  %v1403_v43 = vadd.f32 %v1402_v40, %v1348_v32  ;;  %v1443_v52 = vmul.f32 0.01, %v1411_v46  ;;  %vm1435_vm11 = vcmp.ge.f32.partialorder %v1411_v46, 0.0 }
 0xa17   :  { %v1343_v45 = vpack.c.bf16 %v1336_v42, %v1335_v41  ;;  %v2037_v35 = vpop.f32.mrf.mxu1  ;;  %v1579_v41 = vsub.s32 7, %v2435_v59 }
 0xa18   :  { %v1414_v48 = vadd.f32 %v2037_v35, %v1348_v32  ;;  %v1441_v50 = vmul.f32 0.01, %v1403_v43  ;;  %vm1433_vm10 = vcmp.ge.f32.partialorder %v1403_v43, 0.0  ;;  %v1451_v55 = vsel %vm1435_vm11, %v1411_v46, %v1443_v52 }
 0xa19   :  { %v1405_v49 = vpop.f32.mrf.mxu1  ;;  %2038 = vmatprep.mubr.msk.bf16.mxu1 %vm1355_vm1, %v1343_v45  ;;  %v2642_v35 = vrot.slane %v2438_v63, %v1579_v41 }
 0xa1a   :  { %vm1436_vm9 = vcmp.ge.f32.partialorder %v1414_v48, 0.0  ;;  %v1444_v36 = vmul.f32 0.01, %v1414_v48  ;;  %v1406_v51 = vadd.f32 %v1405_v49, %v1348_v32  ;;  %2039 = vmatmul.mubr.msk.bf16.gmra.mxu1 %vm1355_vm1, %v1344_v47  ;;  %v1449_v38 = vsel %vm1433_vm10, %v1403_v43, %v1441_v50 }
 0xa1c   :  { %vm1434_vm12 = vcmp.ge.f32.partialorder %v1406_v51, 0.0  ;;  %v1442_v37 = vmul.f32 0.01, %v1406_v51  ;;  %v1452_v53 = vsel %vm1436_vm9, %v1414_v48, %v1444_v36 }
 0xa1d   :  { %v1459_v56 = vpack.c.bf16 %v1452_v53, %v1451_v55 }
 0xa1e   :  { %v1450_v54 = vsel %vm1434_vm12, %v1406_v51, %v1442_v37  ;;  %vm1695_vm12 = vcmask 15360  }
 0xa1f   :  { %v1458_v0 = vpack.c.bf16 %v1450_v54, %v1449_v38 }
 0xa21   :  { %2044 = vmatprep.mubr.msk.bf16.mxu0 %vm1466_vm13, %v1458_v0 }
 0xa22   :  { %2045 = vmatmul.mubr.msk.bf16.vlgmr.msra.gmra.mxu0 %vm1466_vm13, %v1459_v56 }
 0xada   :  { %v2040_v60 = vpop.f32.mrf.mxu1 }
 0xadb   :  { %v1427_v1 = vadd.f32 %v2040_v60, %v1348_v32 }
 0xadc   :  { %v1418_v61 = vpop.f32.mrf.mxu1 }
 0xadd   :  { %v1419_v62 = vadd.f32 %v1418_v61, %v1348_v32  ;;  %v1447_v9 = vmul.f32 0.01, %v1427_v1  ;;  %vm1439_vm1 = vcmp.ge.f32.partialorder %v1427_v1, 0.0 }
 0xade   :  { %v2041_v2 = vpop.f32.mrf.mxu1 }
 0xadf   :  { %v1430_v4 = vadd.f32 %v2041_v2, %v1348_v32  ;;  %v1445_v6 = vmul.f32 0.01, %v1419_v62  ;;  %vm1437_vm0 = vcmp.ge.f32.partialorder %v1419_v62, 0.0  ;;  %v1455_v18 = vsel %vm1439_vm1, %v1427_v1, %v1447_v9 }
 0xae0   :  { %v1421_v5 = vpop.f32.mrf.mxu1 }
 0xae1   :  { %vm1440_vm15 = vcmp.ge.f32.partialorder %v1430_v4, 0.0  ;;  %v1448_v7 = vmul.f32 0.01, %v1430_v4  ;;  %v1422_v8 = vadd.f32 %v1421_v5, %v1348_v32  ;;  %v1453_v15 = vsel %vm1437_vm0, %v1419_v62, %v1445_v6 }
 0xae2   :  { %v2046_v12 = vpop.f32.mrf.mxu0 }
 0xae3   :  { %vm1438_vm2 = vcmp.ge.f32.partialorder %v1422_v8, 0.0  ;;  %v1446_v10 = vmul.f32 0.01, %v1422_v8  ;;  %v1456_v13 = vsel %vm1440_vm15, %v1430_v4, %v1448_v7  ;;  %v1526_v20 = vadd.f32 %v2046_v12, %v1465_v11 }
 0xae4   :  { %v1517_v14 = vpop.f32.mrf.mxu0  ;;  %v1461_v22 = vpack.c.bf16 %v1456_v13, %v1455_v18 }
 0xae5   :  { %v1454_v16 = vsel %vm1438_vm2, %v1422_v8, %v1446_v10  ;;  %v1518_v17 = vadd.f32 %v1517_v14, %v1465_v11  ;;  %v1558_v28 = vmul.f32 0.01, %v1526_v20  ;;  %vm1550_vm5 = vcmp.ge.f32.partialorder %v1526_v20, 0.0 }
 0xae6   :  { %v1460_v19 = vpack.c.bf16 %v1454_v16, %v1453_v15  ;;  %v2047_v21 = vpop.f32.mrf.mxu0 }
 0xae7   :  { %v1529_v23 = vadd.f32 %v2047_v21, %v1465_v11  ;;  %v1556_v25 = vmul.f32 0.01, %v1518_v17  ;;  %vm1548_vm4 = vcmp.ge.f32.partialorder %v1518_v17, 0.0  ;;  %v1566_v33 = vsel %vm1550_vm5, %v1526_v20, %v1558_v28 }
 0xae8   :  { %v1520_v24 = vpop.f32.mrf.mxu0  ;;  %2048 = vmatprep.mubr.msk.bf16.mxu0 %vm1466_vm13, %v1460_v19 }
 0xae9   :  { %vm1551_vm3 = vcmp.ge.f32.partialorder %v1529_v23, 0.0  ;;  %v1559_v26 = vmul.f32 0.01, %v1529_v23  ;;  %v1521_v27 = vadd.f32 %v1520_v24, %v1465_v11  ;;  %2049 = vmatmul.mubr.msk.bf16.gmra.mxu0 %vm1466_vm13, %v1461_v22  ;;  %v1564_v31 = vsel %vm1548_vm4, %v1518_v17, %v1556_v25 }
 0xaeb   :  { %vm1549_vm6 = vcmp.ge.f32.partialorder %v1521_v27, 0.0  ;;  %v1557_v29 = vmul.f32 0.01, %v1521_v27  ;;  %v1567_v30 = vsel %vm1551_vm3, %v1529_v23, %v1559_v26 }
 0xaec   :  { %v1574_v39 = vpack.c.bf16 %v1567_v30, %v1566_v33 }
 0xaed   :  { %v1565_v32 = vsel %vm1549_vm6, %v1521_v27, %v1557_v29 }
 0xaee   :  { %v1573_v34 = vpack.c.bf16 %v1565_v32, %v1564_v31 }
 0xaf0   :  { %2054 = vmatprep.mubr.msk.bf16.mxu1 %vm1581_vm7, %v1573_v34 }
 0xaf1   :  { %2055 = vmatmul.mubr.msk.bf16.vlgmr.msra.gmra.mxu1 %vm1581_vm7, %v1574_v39 }
 0xba9   :  { %v2050_v40 = vpop.f32.mrf.mxu0 }
 0xbaa   :  { %v1542_v44 = vadd.f32 %v2050_v40, %v1465_v11 }
 0xbab   :  { %v1533_v42 = vpop.f32.mrf.mxu0 }
 0xbac   :  { %v1534_v43 = vadd.f32 %v1533_v42, %v1465_v11  ;;  %v1562_v36 = vmul.f32 0.01, %v1542_v44  ;;  %vm1554_vm10 = vcmp.ge.f32.partialorder %v1542_v44, 0.0 }
 0xbad   :  { %v2051_v45 = vpop.f32.mrf.mxu0 }
 0xbae   :  { %v1545_v46 = vadd.f32 %v2051_v45, %v1465_v11  ;;  %v1560_v48 = vmul.f32 0.01, %v1534_v43  ;;  %vm1552_vm9 = vcmp.ge.f32.partialorder %v1534_v43, 0.0  ;;  %v1570_v0 = vsel %vm1554_vm10, %v1542_v44, %v1562_v36 }
 0xbaf   :  { %v1536_v47 = vpop.f32.mrf.mxu0 }
 0xbb0   :  { %vm1555_vm8 = vcmp.ge.f32.partialorder %v1545_v46, 0.0  ;;  %v1563_v49 = vmul.f32 0.01, %v1545_v46  ;;  %v1537_v50 = vadd.f32 %v1536_v47, %v1465_v11  ;;  %v1568_v38 = vsel %vm1552_vm9, %v1534_v43, %v1560_v48 }
 0xbb1   :  { %v2056_v51 = vpop.f32.mrf.mxu1 }
 0xbb2   :  { %vm1553_vm11 = vcmp.ge.f32.partialorder %v1537_v50, 0.0  ;;  %v1561_v52 = vmul.f32 0.01, %v1537_v50  ;;  %v1641_v59 = vadd.f32 %v2056_v51, %v2642_v35  ;;  %v1571_v37 = vsel %vm1555_vm8, %v1545_v46, %v1563_v49 }
 0xbb3   :  { %v1632_v53 = vpop.f32.mrf.mxu1  ;;  %v1576_v58 = vpack.c.bf16 %v1571_v37, %v1570_v0 }
 0xbb4   :  { %v1569_v54 = vsel %vm1553_vm11, %v1537_v50, %v1561_v52  ;;  %v1665_v55 = vmul.f32 0.5, %v1641_v59  ;;  %v1633_v63 = vadd.f32 %v1632_v53, %v2642_v35 }
 0xbb5   :  { %v1575_v56 = vpack.c.bf16 %v1569_v54, %v1568_v38  ;;  %v2057_v57 = vpop.f32.mrf.mxu1 }
 0xbb6   :  { %2178 = vtanh.f32 %v1665_v55  ;;  %v1663_v60 = vmul.f32 0.5, %v1633_v63  ;;  %v1644_v61 = vadd.f32 %v2057_v57, %v2642_v35 }
 0xbb7   :  { %v1635_v62 = vpop.f32.mrf.mxu1  ;;  %2058 = vmatprep.mubr.msk.bf16.mxu1 %vm1581_vm7, %v1575_v56 }
 0xbb8   :  { %2180 = vtanh.f32 %v1663_v60  ;;  %v1666_v1 = vmul.f32 0.5, %v1644_v61  ;;  %v1636_v2 = vadd.f32 %v1635_v62, %v2642_v35  ;;  %2059 = vmatmul.mubr.msk.bf16.gmra.mxu1 %vm1581_vm7, %v1576_v58 }
 0xbba   :  { %2182 = vtanh.f32 %v1666_v1  ;;  %v1664_v3 = vmul.f32 0.5, %v1636_v2 }
 0xbbc   :  { %2184 = vtanh.f32 %v1664_v3 }
 0xbc3   :  { %v2179_v4 = vpop.eup %2178 }
 0xbc4   :  { %v1681_v5 = vadd.f32 1.0, %v2179_v4 }
 0xbc5   :  { %v2181_v6 = vpop.eup %2180 }
 0xbc6   :  { %v1689_v7 = vmul.f32 0.5, %v1681_v5  ;;  %v1679_v8 = vadd.f32 1.0, %v2181_v6 }
 0xbc7   :  { %v2183_v9 = vpop.eup %2182 }
 0xbc8   :  { %1698 = vst.msk [vmem:[%s2692_s6 + $0x10] sm:$0xff] %vm1695_vm12, %v1689_v7  ;;  %v1687_v11 = vmul.f32 0.5, %v1679_v8  ;;  %v1682_v12 = vadd.f32 1.0, %v2183_v9 }
 0xbc9   :  { %v2185_v10 = vpop.eup %2184 }
 0xbca   :  { %1696 = vst.msk [vmem:[%s2692_s6] sm:$0xff] %vm1695_vm12, %v1687_v11  ;;  %v1690_v13 = vmul.f32 0.5, %v1682_v12  ;;  %v1680_v14 = vadd.f32 1.0, %v2185_v10 }
 0xbcc   :  { %1699 = vst.msk [vmem:[%s2692_s6 + $0x18] sm:$0xff] %vm1695_vm12, %v1690_v13  ;;  %v1688_v15 = vmul.f32 0.5, %v1680_v14 }
 0xbce   :  { %1697 = vst.msk [vmem:[%s2692_s6 + $0x8] sm:$0xff] %vm1695_vm12, %v1688_v15 }
 0xc78   :  { %v2060_v16 = vpop.f32.mrf.mxu1 }
 0xc79   :  { %v1657_v17 = vadd.f32 %v2060_v16, %v2642_v35 }
 0xc7a   :  { %v1648_v18 = vpop.f32.mrf.mxu1 }
 0xc7b   :  { %v1669_v19 = vmul.f32 0.5, %v1657_v17  ;;  %v1649_v20 = vadd.f32 %v1648_v18, %v2642_v35 }
 0xc7c   :  { %v2061_v21 = vpop.f32.mrf.mxu1 }
 0xc7d   :  { %2186 = vtanh.f32 %v1669_v19  ;;  %v1667_v22 = vmul.f32 0.5, %v1649_v20  ;;  %v1660_v23 = vadd.f32 %v2061_v21, %v2642_v35 }
 0xc7e   :  { %v1651_v24 = vpop.f32.mrf.mxu1 }
 0xc7f   :  { %2188 = vtanh.f32 %v1667_v22  ;;  %v1670_v25 = vmul.f32 0.5, %v1660_v23  ;;  %v1652_v26 = vadd.f32 %v1651_v24, %v2642_v35 }
 0xc81   :  { %2190 = vtanh.f32 %v1670_v25  ;;  %v1668_v27 = vmul.f32 0.5, %v1652_v26 }
 0xc83   :  { %2192 = vtanh.f32 %v1668_v27 }
 0xc8a   :  { %v2187_v28 = vpop.eup %2186 }
 0xc8b   :  { %v1685_v29 = vadd.f32 1.0, %v2187_v28 }
 0xc8c   :  { %v2189_v30 = vpop.eup %2188 }
 0xc8d   :  { %v1693_v31 = vmul.f32 0.5, %v1685_v29  ;;  %v1683_v32 = vadd.f32 1.0, %v2189_v30 }
 0xc8e   :  { %v2191_v33 = vpop.eup %2190 }
 0xc8f   :  { %1702 = vst.msk [vmem:[%s2692_s6 + $0x30] sm:$0xff] %vm1695_vm12, %v1693_v31  ;;  %v1691_v34 = vmul.f32 0.5, %v1683_v32  ;;  %v1686_v39 = vadd.f32 1.0, %v2191_v33 }
 0xc90   :  { %v2193_v40 = vpop.eup %2192 }
 0xc91   :  { %1700 = vst.msk [vmem:[%s2692_s6 + $0x20] sm:$0xff] %vm1695_vm12, %v1691_v34  ;;  %v1694_v41 = vmul.f32 0.5, %v1686_v39  ;;  %v1684_v42 = vadd.f32 1.0, %v2193_v40 }
 0xc93   :  { %1703 = vst.msk [vmem:[%s2692_s6 + $0x38] sm:$0xff] %vm1695_vm12, %v1694_v41  ;;  %v1692_v43 = vmul.f32 0.5, %v1684_v42 }
 0xc95   :  { %1701 = vst.msk [vmem:[%s2692_s6 + $0x28] sm:$0xff] %vm1695_vm12, %v1692_v43 }
 0xc96   :  { %1712 = vsyncpa [#allocation5], 1 }
 0xc97   :  { %1713 = vsyncpa [#allocation7], 1 }

</bundles_post_ra>
